<compile_context>
chip_gen: v5e
topology: v5e:2x2
jax: 0.10.0
libtpu: 0.0.40
codegen_flags: <defaults>
</compile_context>

<pallas_src>
import functools

import jax
import jax.numpy as jnp
from jax.experimental import pallas as pl
from jax.experimental.pallas import tpu as pltpu


def _round_up(x, m):
    return (x + m - 1) // m * m


def _cdiv(a, b):
    return -(-a // b)


# Split a single-tile batch into >=2 tiles (for v7x's 2 TensorCores) once each
# half-tile would still have at least this many rows.
_MIN_SPLIT_ROWS = 128


def _apply_nonlinearity(x, kind):
    if kind == "relu":
        return jnp.maximum(x, 0.0)
    elif kind == "elu":
        # ELU, alpha=1.0 (PyTorch default). The transcendental is evaluated in
        # bf16 so that v6e/v7x use the bf16 EUP path; on v5e (no bf16 EUP) it
        # falls back to f32 and ELU stays EUP-bound -- a hard ceiling there.
        # exp(min(x,0)) - 1 is used (exp has a guaranteed Mosaic lowering); the
        # clamp keeps the inactive branch from overflowing, the subtract is f32.
        e = jnp.exp(jnp.minimum(x, 0.0).astype(jnp.bfloat16)).astype(jnp.float32)
        return jnp.where(x > 0.0, x, e - 1.0)
    else:
        # leaky_relu with PyTorch default negative_slope=0.01
        return jnp.where(x > 0.0, x, 0.01 * x)


def _critic_kernel(sa_ref,
                   w14_ref, b14_ref,
                   w2_ref, b2_ref, w5_ref, b5_ref,
                   w36_ref, b36_ref,
                   q_ref, *, nonlinearity, h1_pad):
    # bf16 operands into the MXU, f32 accumulation everywhere.
    sa = sa_ref[...].astype(jnp.bfloat16)

    # Fused first layers of both heads: ONE (TB, S+A) x (S+A, 2*H1_PAD) matmul.
    hg = jnp.dot(sa, w14_ref[...], preferred_element_type=jnp.float32) + b14_ref[...]
    hg = _apply_nonlinearity(hg, nonlinearity).astype(jnp.bfloat16)
    h = hg[:, :h1_pad]   # Q1 head activations
    g = hg[:, h1_pad:]   # Q2 head activations

    h2 = jnp.dot(h, w2_ref[...], preferred_element_type=jnp.float32) + b2_ref[...]
    h2 = _apply_nonlinearity(h2, nonlinearity)
    g2 = jnp.dot(g, w5_ref[...], preferred_element_type=jnp.float32) + b5_ref[...]
    g2 = _apply_nonlinearity(g2, nonlinearity)

    # N=1 output projections: VPU multiply + lane (XLU) reduction instead of a
    # 1-lane-wide MXU matmul; single lane-fused (TB, 2) store.
    q1 = jnp.sum(h2 * w36_ref[0:1, :], axis=-1, keepdims=True)
    q2 = jnp.sum(g2 * w36_ref[1:2, :], axis=-1, keepdims=True)
    q = jnp.concatenate([q1, q2], axis=1) + b36_ref[...]
    q_ref[...] = q.astype(q_ref.dtype)


def init_critic_params(key, state_dim, action_dim,
                       hidden1_node=400, hidden2_node=300):
    """PyTorch nn.Linear-style init (U(-1/sqrt(fan_in), +)), weights stored (in, out)."""
    in_dim = state_dim + action_dim

    def linear(k, fan_in, fan_out):
        kw, kb = jax.random.split(k)
        bound = 1.0 / jnp.sqrt(jnp.float32(fan_in))
        w = jax.random.uniform(kw, (fan_in, fan_out), jnp.float32, -bound, bound)
        b = jax.random.uniform(kb, (fan_out,), jnp.float32, -bound, bound)
        return w, b

    keys = jax.random.split(key, 6)
    w1, b1 = linear(keys[0], in_dim, hidden1_node)        # l1
    w2, b2 = linear(keys[1], hidden1_node, hidden2_node)  # l2
    w3, b3 = linear(keys[2], hidden2_node, 1)             # l3
    w4, b4 = linear(keys[3], in_dim, hidden1_node)        # l4
    w5, b5 = linear(keys[4], hidden1_node, hidden2_node)  # l5
    w6, b6 = linear(keys[5], hidden2_node, 1)             # l6
    return (w1, b1, w2, b2, w3, b3, w4, b4, w5, b5, w6, b6)


def prepare_critic_params(params, lane_multiple=128):
    """One-time packing for the kernel: pad hidden dims to lane multiples,
    fuse l1|l4 into one (S+A, 2*h1p) weight, cast matmul weights to bf16.

    lane_multiple should stay 128 on all TPU generations (256 would pad
    hidden2 300->512 and add ~33% wasted matmul / VPU / reduction work).
    """
    (w1, b1, w2, b2, w3, b3, w4, b4, w5, b5, w6, b6) = params
    in_dim, h1 = w1.shape
    h2 = w2.shape[1]
    h1p = _round_up(h1, lane_multiple)
    h2p = _round_up(h2, lane_multiple)

    def pad_to(x, shape):
        return jnp.pad(x, [(0, t - s) for s, t in zip(x.shape, shape)])

    # Fused l1|l4 -> (in_dim, 2*h1p); padded columns get zero weight + zero
    # bias, so their activations are exactly zero through relu/elu/leaky_relu.
    w14 = jnp.concatenate([pad_to(w1, (in_dim, h1p)),
                           pad_to(w4, (in_dim, h1p))], axis=1).astype(jnp.bfloat16)
    b14 = jnp.concatenate([pad_to(b1, (h1p,)), pad_to(b4, (h1p,))])[None, :]

    w2p = pad_to(w2, (h1p, h2p)).astype(jnp.bfloat16)
    w5p = pad_to(w5, (h1p, h2p)).astype(jnp.bfloat16)
    b2p = pad_to(b2, (h2p,))[None, :]
    b5p = pad_to(b5, (h2p,))[None, :]

    # Final projection columns stay f32 (they ride the VPU, tiny footprint).
    w36 = jnp.stack([pad_to(w3[:, 0], (h2p,)), pad_to(w6[:, 0], (h2p,))], axis=0)
    b36 = jnp.concatenate([b3, b6])[None, :]  # (1, 2)

    return (w14, b14, w2p, b2p, w5p, b5p, w36, b36)


def _choose_batch_tile(batch, batch_tile):
    """Balanced batch tile: multiple of 8 sublanes, <= batch_tile rows,
    minimal padding, and >=2 grid steps for mid/large batches so both of
    v7x's TensorCores get work (harmless on single-TC v5e/v6e)."""
    n_tiles = max(_cdiv(batch, batch_tile), 1)
    if n_tiles == 1 and batch >= 2 * _MIN_SPLIT_ROWS:
        n_tiles = 2
    tb = _round_up(_cdiv(batch, n_tiles), 8)
    return min(tb, _round_up(batch_tile, 8))


def critic_forward(state, action, prepared, nonlinearity="relu",
                   batch_tile=1024, vmem_limit_bytes=None):
    """Pallas equivalent of Critic.forward. Returns (q1, q2), each (B, 1).

    batch_tile <= 2048 is VMEM-safe on every generation (including v7x's
    64 MiB); set vmem_limit_bytes explicitly if you push it higher.
    """
    B, S = state.shape
    A = action.shape[1]
    (w14, b14, w2p, b2p, w5p, b5p, w36, b36) = prepared
    h1p, h2p = w2p.shape

    # Tiny (B, S+A) HBM concat so layer 1 is a single fused matmul operand.
    sa = jnp.concatenate([state, action], axis=1)

    TB = _choose_batch_tile(B, batch_tile)
    B_pad = _round_up(B, TB)
    if B_pad != B:
        sa = jnp.pad(sa, ((0, B_pad - B), (0, 0)))
    grid = (B_pad // TB,)

    kernel = functools.partial(_critic_kernel,
                               nonlinearity=nonlinearity, h1_pad=h1p)

    def batch_spec(cols):
        return pl.BlockSpec((TB, cols), lambda i: (i, 0))

    def resident(arr):
        # Full-array block; same block index every step -> stays VMEM-resident.
        return pl.BlockSpec(arr.shape, lambda i: (0, 0))

    weight_args = (w14, b14, w2p, b2p, w5p, b5p, w36, b36)

    flops = 2 * B_pad * ((S + A) * 2 * h1p + 2 * h1p * h2p + 2 * h2p)
    transcendentals = (2 * B_pad * (h1p + h2p)) if nonlinearity == "elu" else 0
    bytes_accessed = (sum(int(w.size) * w.dtype.itemsize for w in weight_args)
                      + B_pad * (S + A) * 4 + B_pad * 2 * 4)

    q12 = pl.pallas_call(
        kernel,
        out_shape=jax.ShapeDtypeStruct((B_pad, 2), jnp.float32),
        grid=grid,
        in_specs=[batch_spec(S + A)] + [resident(w) for w in weight_args],
        out_specs=batch_spec(2),
        compiler_params=pltpu.CompilerParams(
            dimension_semantics=("parallel",),
            vmem_limit_bytes=vmem_limit_bytes),
        cost_estimate=pl.CostEstimate(flops=flops,
                                      transcendentals=transcendentals,
                                      bytes_accessed=bytes_accessed),
    )(sa, *weight_args)

    return q12[:B, 0:1], q12[:B, 1:2]


def _reference_prepared(state, action, prepared, nonlinearity="relu"):
    """Pure-JAX mirror of the kernel pipeline (same bf16 rounding) for tight checks."""
    (w14, b14, w2p, b2p, w5p, b5p, w36, b36) = prepared
    h1p = w2p.shape[0]
    nl = lambda x: _apply_nonlinearity(x, nonlinearity)
    sa = jnp.concatenate([state, action], axis=1).astype(jnp.bfloat16)
    hg = jnp.dot(sa, w14, preferred_element_type=jnp.float32) + b14
    hg = nl(hg).astype(jnp.bfloat16)
    h, g = hg[:, :h1p], hg[:, h1p:]
    h2 = nl(jnp.dot(h, w2p, preferred_element_type=jnp.float32) + b2p)
    g2 = nl(jnp.dot(g, w5p, preferred_element_type=jnp.float32) + b5p)
    q1 = jnp.sum(h2 * w36[0:1, :], axis=-1, keepdims=True)
    q2 = jnp.sum(g2 * w36[1:2, :], axis=-1, keepdims=True)
    q = jnp.concatenate([q1, q2], axis=1) + b36
    return q[:, 0:1], q[:, 1:2]


def _reference_fp32(state, action, params, nonlinearity="relu"):
    """Unpadded full-f32 reference matching the PyTorch module's math."""
    (w1, b1, w2, b2, w3, b3, w4, b4, w5, b5, w6, b6) = params

    def nl(x):
        if nonlinearity == "relu":
            return jnp.maximum(x, 0.0)
        elif nonlinearity == "elu":
            return jnp.where(x > 0, x, jnp.expm1(jnp.minimum(x, 0.0)))
        else:
            return jnp.where(x > 0, x, 0.01 * x)

    sa = jnp.concatenate([state, action], axis=1)
    q1 = nl(sa @ w1 + b1)
    q1 = nl(q1 @ w2 + b2)
    q1 = q1 @ w3 + b3
    q2 = nl(sa @ w4 + b4)
    q2 = nl(q2 @ w5 + b5)
    q2 = q2 @ w6 + b6
    return q1, q2


if __name__ == "__main__":
    key = jax.random.PRNGKey(0)
    k_param, k_state, k_action = jax.random.split(key, 3)

    batch = 8
    state_dim = 16
    action_dim = 8
    hidden1 = 400
    hidden2 = 300

    params = init_critic_params(k_param, state_dim, action_dim, hidden1, hidden2)
    prepared = prepare_critic_params(params)

    state = jax.random.normal(k_state, (batch, state_dim), jnp.float32)
    action = jax.random.normal(k_action, (batch, action_dim), jnp.float32)

    # All three Critic.forward nonlinearity branches.
    for nl_kind in ("relu", "elu", "leaky_relu"):
        q1, q2 = critic_forward(state, action, prepared, nonlinearity=nl_kind)
        jax.block_until_ready((q1, q2))
        assert q1.shape == (batch, 1) and q2.shape == (batch, 1)

        # Tight check against a pure-JAX mirror of the padded/fused/bf16
        # pipeline (elu uses a slightly looser bound: the bf16 exp may differ
        # by an ulp between the Mosaic EUP path and XLA's implementation).
        tol = 1e-2 if nl_kind == "elu" else 1e-3
        p1, p2 = _reference_prepared(state, action, prepared, nonlinearity=nl_kind)
        assert jnp.allclose(q1, p1, atol=tol, rtol=tol), nl_kind
        assert jnp.allclose(q2, p2, atol=tol, rtol=tol), nl_kind

        # Loose check against the unpadded fp32 PyTorch-equivalent math (bf16
        # weights + bf16 layer-1 activations -> ~1e-2-level deviation).
        r1, r2 = _reference_fp32(state, action, params, nonlinearity=nl_kind)
        assert jnp.allclose(q1, r1, atol=5e-2, rtol=5e-2), nl_kind
        assert jnp.allclose(q2, r2, atol=5e-2, rtol=5e-2), nl_kind

    # Exercise the adaptive multi-tile path (>=2 grid steps, balanced tiles,
    # minimal batch padding) used for mid/large batches on v7x.
    big_b = 300
    ks, ka = jax.random.split(jax.random.PRNGKey(1))
    bstate = jax.random.normal(ks, (big_b, state_dim), jnp.float32)
    baction = jax.random.normal(ka, (big_b, action_dim), jnp.float32)
    q1b, q2b = critic_forward(bstate, baction, prepared, nonlinearity="relu")
    jax.block_until_ready((q1b, q2b))
    assert q1b.shape == (big_b, 1) and q2b.shape == (big_b, 1)
    p1b, p2b = _reference_prepared(bstate, baction, prepared, nonlinearity="relu")
    assert jnp.allclose(q1b, p1b, atol=1e-3, rtol=1e-3)
    assert jnp.allclose(q2b, p2b, atol=1e-3, rtol=1e-3)

    # TODO(synk): RLNN.set_params/get_params/get_grads/save_model/load_model are
    # host-side numpy (de)serialization helpers with no kernel equivalent; omitted.

    print("KERNEL_OK")
</pallas_src>

<mosaic_0001>
module attributes {stable_mosaic.version = 11 : i64} {
  func.func @_critic_kernel(%arg0: i32, %arg1: memref<8x24xf32, #tpu.memory_space<vmem>>, %arg2: memref<24x1024xbf16, #tpu.memory_space<vmem>>, %arg3: memref<1x1024xf32, #tpu.memory_space<vmem>>, %arg4: memref<512x384xbf16, #tpu.memory_space<vmem>>, %arg5: memref<1x384xf32, #tpu.memory_space<vmem>>, %arg6: memref<512x384xbf16, #tpu.memory_space<vmem>>, %arg7: memref<1x384xf32, #tpu.memory_space<vmem>>, %arg8: memref<2x384xf32, #tpu.memory_space<vmem>>, %arg9: memref<1x2xf32, #tpu.memory_space<vmem>>, %arg10: memref<8x2xf32, #tpu.memory_space<vmem>>) attributes {dimension_semantics = [#tpu.dimension_semantics<parallel>], iteration_bounds = array<i64: 1>, scalar_prefetch = 0 : i64, scratch_operands = 0 : i64, tpu.core_type = #tpu.core_type<tc>, window_params = [{transform_indices = @transform_0, window_bounds = array<i64: 8, 24>}, {pipeline_mode = #tpu.pipeline_mode<synchronous>, transform_indices = @transform_1, window_bounds = array<i64: 24, 1024>}, {pipeline_mode = #tpu.pipeline_mode<synchronous>, transform_indices = @transform_2, window_bounds = array<i64: 1, 1024>}, {pipeline_mode = #tpu.pipeline_mode<synchronous>, transform_indices = @transform_3, window_bounds = array<i64: 512, 384>}, {pipeline_mode = #tpu.pipeline_mode<synchronous>, transform_indices = @transform_4, window_bounds = array<i64: 1, 384>}, {pipeline_mode = #tpu.pipeline_mode<synchronous>, transform_indices = @transform_5, window_bounds = array<i64: 512, 384>}, {pipeline_mode = #tpu.pipeline_mode<synchronous>, transform_indices = @transform_6, window_bounds = array<i64: 1, 384>}, {pipeline_mode = #tpu.pipeline_mode<synchronous>, transform_indices = @transform_7, window_bounds = array<i64: 2, 384>}, {pipeline_mode = #tpu.pipeline_mode<synchronous>, transform_indices = @transform_8, window_bounds = array<i64: 1, 2>}, {transform_indices = @transform_9, window_bounds = array<i64: 8, 2>}]} {
    %c0 = arith.constant 0 : index
    %c0_0 = arith.constant 0 : index
    %0 = vector.load %arg1[%c0, %c0_0] : memref<8x24xf32, #tpu.memory_space<vmem>>, vector<8x24xf32>
    %1 = arith.truncf %0 : vector<8x24xf32> to vector<8x24xbf16>
    %c0_1 = arith.constant 0 : index
    %c0_2 = arith.constant 0 : index
    %2 = vector.load %arg2[%c0_1, %c0_2] : memref<24x1024xbf16, #tpu.memory_space<vmem>>, vector<24x1024xbf16>
    %cst = arith.constant dense<0.000000e+00> : vector<8x1024xf32>
    %3 = tpu.matmul %1, %2, %cst {dimension_numbers = #tpu.dot_dimension_numbers<[1], [0], [0], [1], [0, 0, 1, 1], [], []>} : vector<8x24xbf16>, vector<24x1024xbf16>, vector<8x1024xf32> -> vector<8x1024xf32>
    %c0_3 = arith.constant 0 : index
    %c0_4 = arith.constant 0 : index
    %4 = vector.load %arg3[%c0_3, %c0_4] : memref<1x1024xf32, #tpu.memory_space<vmem>>, vector<1x1024xf32>
    %5 = vector.broadcast %4 : vector<1x1024xf32> to vector<8x1024xf32>
    %6 = arith.addf %3, %5 : vector<8x1024xf32>
    %cst_5 = arith.constant 0.000000e+00 : f32
    %7 = vector.broadcast %cst_5 : f32 to vector<8x1024xf32>
    %8 = arith.maximumf %6, %7 : vector<8x1024xf32>
    %9 = arith.truncf %8 : vector<8x1024xf32> to vector<8x1024xbf16>
    %10 = vector.extract_strided_slice %9 {offsets = [0, 0], sizes = [8, 512], strides = [1, 1]} : vector<8x1024xbf16> to vector<8x512xbf16>
    %11 = vector.extract_strided_slice %9 {offsets = [0, 512], sizes = [8, 512], strides = [1, 1]} : vector<8x1024xbf16> to vector<8x512xbf16>
    %c0_6 = arith.constant 0 : index
    %c0_7 = arith.constant 0 : index
    %12 = vector.load %arg4[%c0_6, %c0_7] : memref<512x384xbf16, #tpu.memory_space<vmem>>, vector<512x384xbf16>
    %cst_8 = arith.constant dense<0.000000e+00> : vector<8x384xf32>
    %13 = tpu.matmul %10, %12, %cst_8 {dimension_numbers = #tpu.dot_dimension_numbers<[1], [0], [0], [1], [0, 0, 1, 1], [], []>} : vector<8x512xbf16>, vector<512x384xbf16>, vector<8x384xf32> -> vector<8x384xf32>
    %c0_9 = arith.constant 0 : index
    %c0_10 = arith.constant 0 : index
    %14 = vector.load %arg5[%c0_9, %c0_10] : memref<1x384xf32, #tpu.memory_space<vmem>>, vector<1x384xf32>
    %15 = vector.broadcast %14 : vector<1x384xf32> to vector<8x384xf32>
    %16 = arith.addf %13, %15 : vector<8x384xf32>
    %cst_11 = arith.constant 0.000000e+00 : f32
    %17 = vector.broadcast %cst_11 : f32 to vector<8x384xf32>
    %18 = arith.maximumf %16, %17 : vector<8x384xf32>
    %c0_12 = arith.constant 0 : index
    %c0_13 = arith.constant 0 : index
    %19 = vector.load %arg6[%c0_12, %c0_13] : memref<512x384xbf16, #tpu.memory_space<vmem>>, vector<512x384xbf16>
    %cst_14 = arith.constant dense<0.000000e+00> : vector<8x384xf32>
    %20 = tpu.matmul %11, %19, %cst_14 {dimension_numbers = #tpu.dot_dimension_numbers<[1], [0], [0], [1], [0, 0, 1, 1], [], []>} : vector<8x512xbf16>, vector<512x384xbf16>, vector<8x384xf32> -> vector<8x384xf32>
    %c0_15 = arith.constant 0 : index
    %c0_16 = arith.constant 0 : index
    %21 = vector.load %arg7[%c0_15, %c0_16] : memref<1x384xf32, #tpu.memory_space<vmem>>, vector<1x384xf32>
    %22 = vector.broadcast %21 : vector<1x384xf32> to vector<8x384xf32>
    %23 = arith.addf %20, %22 : vector<8x384xf32>
    %cst_17 = arith.constant 0.000000e+00 : f32
    %24 = vector.broadcast %cst_17 : f32 to vector<8x384xf32>
    %25 = arith.maximumf %23, %24 : vector<8x384xf32>
    %c0_18 = arith.constant 0 : index
    %c0_19 = arith.constant 0 : index
    %26 = vector.load %arg8[%c0_18, %c0_19] : memref<2x384xf32, #tpu.memory_space<vmem>>, vector<1x384xf32>
    %27 = vector.broadcast %26 : vector<1x384xf32> to vector<8x384xf32>
    %28 = arith.mulf %18, %27 : vector<8x384xf32>
    %cst_20 = arith.constant dense<0.000000e+00> : vector<8xf32>
    %29 = vector.multi_reduction <add>, %28, %cst_20 [1] : vector<8x384xf32> to vector<8xf32>
    %30 = vector.shape_cast %29 : vector<8xf32> to vector<8x1xf32>
    %c1 = arith.constant 1 : index
    %c0_21 = arith.constant 0 : index
    %31 = vector.load %arg8[%c1, %c0_21] : memref<2x384xf32, #tpu.memory_space<vmem>>, vector<1x384xf32>
    %32 = vector.broadcast %31 : vector<1x384xf32> to vector<8x384xf32>
    %33 = arith.mulf %25, %32 : vector<8x384xf32>
    %cst_22 = arith.constant dense<0.000000e+00> : vector<8xf32>
    %34 = vector.multi_reduction <add>, %33, %cst_22 [1] : vector<8x384xf32> to vector<8xf32>
    %35 = vector.shape_cast %34 : vector<8xf32> to vector<8x1xf32>
    %36 = tpu.concatenate %30, %35 in 1 : vector<8x1xf32>, vector<8x1xf32> -> vector<8x2xf32>
    %c0_23 = arith.constant 0 : index
    %c0_24 = arith.constant 0 : index
    %37 = vector.load %arg9[%c0_23, %c0_24] : memref<1x2xf32, #tpu.memory_space<vmem>>, vector<1x2xf32>
    %38 = vector.broadcast %37 : vector<1x2xf32> to vector<8x2xf32>
    %39 = arith.addf %36, %38 : vector<8x2xf32>
    %c0_25 = arith.constant 0 : index
    %c0_26 = arith.constant 0 : index
    %40 = vector.load %arg10[%c0_25, %c0_26] : memref<8x2xf32, #tpu.memory_space<vmem>>, vector<8x2xf32>
    tpu.vector_store %arg10[%c0_25, %c0_26], %39 {strides = array<i32>} : memref<8x2xf32, #tpu.memory_space<vmem>>, vector<8x2xf32>,
    return
  }
  func.func @transform_0(%arg0: i32) -> (i32, i32) {
    %c0_i32 = arith.constant 0 : i32
    %c0_i32_0 = arith.constant 0 : i32
    return %arg0, %c0_i32 : i32, i32
  }
  func.func @transform_1(%arg0: i32) -> (i32, i32) {
    %c0_i32 = arith.constant 0 : i32
    %c0_i32_0 = arith.constant 0 : i32
    %c0_i32_1 = arith.constant 0 : i32
    return %c0_i32, %c0_i32_0 : i32, i32
  }
  func.func @transform_2(%arg0: i32) -> (i32, i32) {
    %c0_i32 = arith.constant 0 : i32
    %c0_i32_0 = arith.constant 0 : i32
    %c0_i32_1 = arith.constant 0 : i32
    return %c0_i32, %c0_i32_0 : i32, i32
  }
  func.func @transform_3(%arg0: i32) -> (i32, i32) {
    %c0_i32 = arith.constant 0 : i32
    %c0_i32_0 = arith.constant 0 : i32
    %c0_i32_1 = arith.constant 0 : i32
    return %c0_i32, %c0_i32_0 : i32, i32
  }
  func.func @transform_4(%arg0: i32) -> (i32, i32) {
    %c0_i32 = arith.constant 0 : i32
    %c0_i32_0 = arith.constant 0 : i32
    %c0_i32_1 = arith.constant 0 : i32
    return %c0_i32, %c0_i32_0 : i32, i32
  }
  func.func @transform_5(%arg0: i32) -> (i32, i32) {
    %c0_i32 = arith.constant 0 : i32
    %c0_i32_0 = arith.constant 0 : i32
    %c0_i32_1 = arith.constant 0 : i32
    return %c0_i32, %c0_i32_0 : i32, i32
  }
  func.func @transform_6(%arg0: i32) -> (i32, i32) {
    %c0_i32 = arith.constant 0 : i32
    %c0_i32_0 = arith.constant 0 : i32
    %c0_i32_1 = arith.constant 0 : i32
    return %c0_i32, %c0_i32_0 : i32, i32
  }
  func.func @transform_7(%arg0: i32) -> (i32, i32) {
    %c0_i32 = arith.constant 0 : i32
    %c0_i32_0 = arith.constant 0 : i32
    %c0_i32_1 = arith.constant 0 : i32
    return %c0_i32, %c0_i32_0 : i32, i32
  }
  func.func @transform_8(%arg0: i32) -> (i32, i32) {
    %c0_i32 = arith.constant 0 : i32
    %c0_i32_0 = arith.constant 0 : i32
    %c0_i32_1 = arith.constant 0 : i32
    return %c0_i32, %c0_i32_0 : i32, i32
  }
  func.func @transform_9(%arg0: i32) -> (i32, i32) {
    %c0_i32 = arith.constant 0 : i32
    %c0_i32_0 = arith.constant 0 : i32
    return %arg0, %c0_i32 : i32, i32
  }
}

</mosaic_0001>

<bundles_post_ra>
// kernel: tpu_custom_call.1
= control target key start
LH: loop header
LB: loop body
LE: loop exit
PB: predicated region body
PF: predicated region fallthrough
CT: control target
= control target key end

     0   :  { %14 = vsyncpa [#allocation3], 0  ;;  %s3440_s0 = inlined_call_operand.hbm [shape: f32[8,24], index: 0, kind: input, shape index: {}]   ;;  %s3441_s1 = inlined_call_operand.hbm [shape: bf16[24,1024], index: 1, kind: input, shape index: {}]   ;;  %s3442_s2 = inlined_call_operand.hbm [shape: f32[1,1024], index: 2, kind: input, shape index: {}]   ;;  %s3443_s3 = inlined_call_operand.hbm [shape: bf16[512,384], index: 3, kind: input, shape index: {}]   ;;  %s3444_s4 = inlined_call_operand.hbm [shape: f32[1,384], index: 4, kind: input, shape index: {}]   ;;  %s3445_s5 = inlined_call_operand.hbm [shape: bf16[512,384], index: 5, kind: input, shape index: {}]   ;;  %s3446_s6 = inlined_call_operand.hbm [shape: f32[1,384], index: 6, kind: input, shape index: {}]   ;;  %s3447_s7 = inlined_call_operand.vmem [shape: f32[2,384], index: 7, kind: input, shape index: {}]   ;;  %s3448_s8 = inlined_call_operand.vmem [shape: f32[1,2], index: 8, kind: input, shape index: {}]   ;;  %s3449_s9 = inlined_call_operand.vmem [shape: f32[8,2], index: 9, kind: output, shape index: {}]  }
   0x1   :  { %15 = vsyncpa [#allocation5], 0 }
   0x2   :  { %16 = vsyncpa [#allocation8], 0  ;;  %s33_s11 = sshll.u32 %s3441_s1, 4  ;;  %s34_s11 = int_to_ptr.hbm [resolvable:$true] %s33_s11 }
   0x3   :  { %17 = vsyncpa [#allocation11], 0  ;;  %s3258_s12 = smov [#allocation4]   ;;  %s57_s16 = sshll.u32 %s3443_s3, 4  ;;  %s58_s16 = int_to_ptr.hbm [resolvable:$true] %s57_s16 }
   0x4   :  { %s35_s13 = sshll.u32 %s3258_s12, 4  ;;  %s3259_s17 = smov 512   ;;  %s36_s13 = int_to_ptr.vmem [resolvable:$true] %s35_s13 }
   0x5   :  { %s3260_s18 = smov 32   ;;  %s3261_s19 = smov [#allocation7]  }
   0x6   :  { %41 = dma.hbm_to_vmem [thread:$0]  %s34_s11, 1536, %s36_s13, [#allocation5], %s3259_s17, %s3259_s17, %s3260_s18  }
   0x7   :  { %s59_s20 = sshll.u32 %s3261_s19, 4  ;;  %s3262_s21 = smov 192   ;;  %s60_s20 = int_to_ptr.vmem [resolvable:$true] %s59_s20 }
   0x8   :  { %s3263_s22 = smov 12   ;;  %s81_s24 = sshll.u32 %s3445_s5, 4  ;;  %s82_s24 = int_to_ptr.hbm [resolvable:$true] %s81_s24 }
   0x9   :  { %65 = dma.hbm_to_vmem [thread:$0]  %s58_s16, 12288, %s60_s20, [#allocation8], %s3262_s21, %s3262_s21, %s3263_s22  }
   0xa   :  { %s3264_s25 = smov [#allocation10]   ;;  %s23_s28 = sshll.u32 %s3440_s0, 4  ;;  %s24_s28 = int_to_ptr.hbm [resolvable:$true] %s23_s28 }
   0xb   :  { %s83_s26 = sshll.u32 %s3264_s25, 4  ;;  %s3265_s29 = smov [#allocation2]   ;;  %s84_s26 = int_to_ptr.vmem [resolvable:$true] %s83_s26 }
   0xc   :  { %89 = dma.hbm_to_vmem [thread:$0]  %s82_s24, 12288, %s84_s26, [#allocation11], %s3262_s21, %s3262_s21, %s3263_s22  }
   0xd   :  { %s25_s30 = sshll.u32 %s3265_s29, 4  ;;  %s47_s12 = sshll.u32 %s3442_s2, 4  ;;  %s26_s30 = int_to_ptr.vmem [resolvable:$true] %s25_s30  ;;  %s48_s12 = int_to_ptr.hbm [resolvable:$true] %s47_s12 }
   0xe   :  { %28 = dma.hbm_to_vmem [thread:$0]  %s24_s28, 128, %s26_s30, [#allocation3]  }
   0xf   :  { %s71_s14 = sshll.u32 %s3444_s4, 4  ;;  %s3266_s15 = smov [#allocation6]   ;;  %s72_s14 = int_to_ptr.hbm [resolvable:$true] %s71_s14 }
  0x10   :  { %s49_s16 = sshll.u32 %s3266_s15, 4  ;;  %s3267_s0 = smov [#allocation9]   ;;  %s50_s16 = int_to_ptr.vmem [resolvable:$true] %s49_s16 }
  0x11   :  { %52 = dma.hbm_to_vmem [thread:$0]  %s48_s12, 128, %s50_s16, [#allocation5]  }
  0x12   :  { %s73_s17 = sshll.u32 %s3267_s0, 4  ;;  %s95_s20 = sshll.u32 %s3446_s6, 4  ;;  %s74_s17 = int_to_ptr.vmem [resolvable:$true] %s73_s17  ;;  %s96_s20 = int_to_ptr.hbm [resolvable:$true] %s95_s20 }
  0x13   :  { %76 = dma.hbm_to_vmem [thread:$0]  %s72_s14, 48, %s74_s17, [#allocation8]  }
  0x14   :  { %s3268_s2 = smov [#allocation12]  }
  0x15   :  { %s97_s21 = sshll.u32 %s3268_s2, 4  ;;  %s98_s21 = int_to_ptr.vmem [resolvable:$true] %s97_s21 }
  0x16   :  { %100 = dma.hbm_to_vmem [thread:$0]  %s96_s20, 48, %s98_s21, [#allocation11]  }
  0x17   :  { %3250 = dma.done.wait [#allocation3], 128  }
  0x18   :  { %3251 = vsyncadd [#allocation3], 4294967168 }
  0x19   :  { %3252 = dma.done.wait [#allocation5], 1664  }
  0x1a   :  { %3253 = vsyncadd [#allocation5], 4294965632 }
  0x1b   :  { %3254 = dma.done.wait [#allocation8], 12336  }
  0x1c   :  { %3255 = vsyncadd [#allocation8], 4294954960 }
  0x1d   :  { %3256 = dma.done.wait [#allocation11], 12336  }
  0x1e   :  { %3257 = vsyncadd [#allocation11], 4294954960  ;;  %v144_v0 = vld [vmem:[#allocation4 + $0x40] sm:$0xff]  ;;  %v145_v1 = vld [vmem:[#allocation4 + $0x48] sm:$0xff]  ;;  %vm230_vm0 = vcmask 1043456   ;;  %vm226_vm1 = vcmask 195584  }
  0x1f   :  { %v2063_v2 = vld [vmem:[#allocation4] sm:$0xf]  ;;  %v194_v3 = vunpack.c.l.b16 %v144_v0  ;;  %v195_v4 = vunpack.c.h.b16 %v144_v0  ;;  %v196_v5 = vunpack.c.l.b16 %v145_v1  ;;  %v197_v6 = vunpack.c.h.b16 %v145_v1  ;;  %v2870_v8 = vld [vmem:[#allocation4 + $0x4] sm:$0xf]  ;;  %v2071_v14 = vld [vmem:[#allocation4 + $0x8] sm:$0xf] }
  0x20   :  { %v2874_v7 = vld [vmem:[#allocation4 + $0x1c] sm:$0xf0]  ;;  %v2065_v9 = vld [vmem:[#allocation4 + $0x20] sm:$0xf0]  ;;  %v2875_v15 = vld [vmem:[#allocation4 + $0x24] sm:$0xf0] }
  0x21   :  { %v210_v10 = vpack.c.b16 %v194_v3, %v194_v3  ;;  %v211_v11 = vpack.c.b16 %v195_v4, %v195_v4  ;;  %v212_v12 = vpack.c.b16 %v196_v5, %v196_v5  ;;  %v213_v13 = vpack.c.b16 %v197_v6, %v197_v6  ;;  %v146_v16 = vld [vmem:[#allocation4 + $0x50] sm:$0xff]  ;;  %v2871_v19 = vld [vmem:[#allocation4 + $0xc] sm:$0xf]  ;;  %v147_v22 = vld [vmem:[#allocation4 + $0x58] sm:$0xff] }
  0x22   :  { %v2064_v17 = vor.u32 %v2874_v7, %v2063_v2  ;;  %v2068_v18 = vor.u32 %v2870_v8, %v2065_v9  ;;  %v2073_v20 = vld [vmem:[#allocation4 + $0x28] sm:$0xf0]  ;;  %v198_v21 = vunpack.c.l.b16 %v146_v16  ;;  %v134_v27 = vld [vmem:[#allocation2] sm:$0xff]  ;;  %v199_v29 = vunpack.c.h.b16 %v146_v16  ;;  %v2079_v34 = vld [vmem:[#allocation4 + $0x10] sm:$0xf] }
  0x23   :  { %v232_v23 = vsel %vm230_vm0, %v210_v10, 0  ;;  %v235_v24 = vsel %vm230_vm0, %v211_v11, 0  ;;  %v238_v25 = vsel %vm230_vm0, %v212_v12, 0  ;;  %v241_v26 = vsel %vm230_vm0, %v213_v13, 0  ;;  %v2876_v38 = vld [vmem:[#allocation4 + $0x2c] sm:$0xf0] }
  0x24   :  { %261 = vmatpush.bf16.msra.mxu0 %v232_v23  ;;  %274 = vmatpush.bf16.msra.mxu1 %v235_v24  ;;  %v214_v28 = vpack.c.b16 %v198_v21, %v198_v21  ;;  %v200_v30 = vunpack.c.l.b16 %v147_v22  ;;  %v201_v31 = vunpack.c.h.b16 %v147_v22  ;;  %v2072_v32 = vor.u32 %v2875_v15, %v2071_v14  ;;  %v2872_v39 = vld [vmem:[#allocation4 + $0x14] sm:$0xf]  ;;  %v2187_v43 = vld [vmem:[#allocation7 + $0xa8] sm:$0xf]  ;;  %v2900_v44 = vld [vmem:[#allocation7 + $0xb0] sm:$0xf0] }
  0x25   :  { %287 = vmatpush.bf16.msra.mxu2 %v238_v25  ;;  %300 = vmatpush.bf16.msra.mxu3 %v241_v26  ;;  %v2076_v33 = vor.u32 %v2871_v19, %v2073_v20  ;;  %v215_v35 = vpack.c.b16 %v199_v29, %v199_v29  ;;  %v2081_v40 = vld [vmem:[#allocation4 + $0x30] sm:$0xf0]  ;;  %v3344_v41 = vpack.c.bf16 %v134_v27, %v134_v27  ;;  %v2087_v46 = vld [vmem:[#allocation4 + $0x18] sm:$0xf]  ;;  %v2283_v47 = vld [vmem:[#allocation7 + $0x168] sm:$0xf] }
  0x26   :  { %v216_v36 = vpack.c.b16 %v200_v30, %v200_v30  ;;  %v217_v37 = vpack.c.b16 %v201_v31, %v201_v31  ;;  %v244_v42 = vsel %vm230_vm0, %v214_v28, 0  ;;  %v2924_v48 = vld [vmem:[#allocation7 + $0x170] sm:$0xf0]  ;;  %v2877_v49 = vld [vmem:[#allocation4 + $0x34] sm:$0xf0]  ;;  %v2080_v54 = vor.u32 %v2876_v38, %v2079_v34 }
  0x27   :  { %v247_v45 = vsel %vm230_vm0, %v215_v35, 0  ;;  %v2873_v50 = vld [vmem:[#allocation4 + $0x1c] sm:$0xf]  ;;  %v2084_v55 = vor.u32 %v2872_v39, %v2081_v40  ;;  %v2175_v56 = vld [vmem:[#allocation7 + $0x90] sm:$0xf]  ;;  %v2188_v58 = vor.u32 %v2900_v44, %v2187_v43  ;;  %v2284_v59 = vor.u32 %v2924_v48, %v2283_v47 }
  0x28   :  { %262 = vmatpush.bf16.msra.mxu0 %v2064_v17  ;;  %275 = vmatpush.bf16.msra.mxu1 %v2068_v18  ;;  %v2089_v51 = vld [vmem:[#allocation4 + $0x38] sm:$0xf0]  ;;  %v250_v52 = vsel %vm230_vm0, %v216_v36, 0  ;;  %v253_v53 = vsel %vm230_vm0, %v217_v37, 0  ;;  %v2379_v57 = vld [vmem:[#allocation7 + $0x228] sm:$0xf]  ;;  %v2088_v2 = vor.u32 %v2877_v49, %v2087_v46 }
  0x29   :  { %288 = vmatpush.bf16.msra.mxu2 %v2072_v32  ;;  %301 = vmatpush.bf16.msra.mxu3 %v2076_v33  ;;  %v2948_v60 = vld [vmem:[#allocation7 + $0x230] sm:$0xf0]  ;;  %v2475_v61 = vld [vmem:[#allocation7 + $0x2e8] sm:$0xf]  ;;  %v2897_v63 = vld [vmem:[#allocation7 + $0x98] sm:$0xf0]  ;;  %v2092_v3 = vor.u32 %v2873_v50, %v2089_v51 }
  0x2a   :  { %v2972_v62 = vld [vmem:[#allocation7 + $0x2f0] sm:$0xf0]  ;;  %v2271_v0 = vld [vmem:[#allocation7 + $0x150] sm:$0xf]  ;;  %v2921_v1 = vld [vmem:[#allocation7 + $0x158] sm:$0xf0]  ;;  %v2380_v4 = vor.u32 %v2948_v60, %v2379_v57  ;;  %v2176_v8 = vor.u32 %v2897_v63, %v2175_v56 }
  0x2b   :  { %2093 = vmatmul.msk.bf16.vlgmr.msra.gmra.mxu0 %vm226_vm1, %v3344_v41  ;;  %2094 = vmatmul.msk.bf16.vlgmr.msra.gmra.mxu1 %vm226_vm1, %v3344_v41  ;;  %v2476_v5 = vor.u32 %v2972_v62, %v2475_v61  ;;  %v2163_v6 = vld [vmem:[#allocation7 + $0x78] sm:$0xf]  ;;  %v2367_v7 = vld [vmem:[#allocation7 + $0x210] sm:$0xf]  ;;  %v2272_v9 = vor.u32 %v2921_v1, %v2271_v0  ;;  %v2945_v10 = vld [vmem:[#allocation7 + $0x218] sm:$0xf0] }
  0x2c   :  { %313 = vmatpush.bf16.msrb.mxu0 %v244_v42  ;;  %326 = vmatpush.bf16.msrb.mxu1 %v247_v45  ;;  %v2463_v11 = vld [vmem:[#allocation7 + $0x2d0] sm:$0xf]  ;;  %v2969_v12 = vld [vmem:[#allocation7 + $0x2d8] sm:$0xf0]  ;;  %v2894_v13 = vld [vmem:[#allocation7 + $0x80] sm:$0xf0]  ;;  %v2368_v16 = vor.u32 %v2945_v10, %v2367_v7 }
  0x2d   :  { %2095 = vmatmul.msk.bf16.vlgmr.msra.gmra.mxu2 %vm226_vm1, %v3344_v41  ;;  %2096 = vmatmul.msk.bf16.vlgmr.msra.gmra.mxu3 %vm226_vm1, %v3344_v41  ;;  %v2259_v14 = vld [vmem:[#allocation7 + $0x138] sm:$0xf]  ;;  %v2918_v15 = vld [vmem:[#allocation7 + $0x140] sm:$0xf0]  ;;  %v2464_v17 = vor.u32 %v2969_v12, %v2463_v11  ;;  %v2164_v19 = vor.u32 %v2894_v13, %v2163_v6  ;;  %v2151_v24 = vld [vmem:[#allocation7 + $0x60] sm:$0xf] }
  0x2e   :  { %339 = vmatpush.bf16.msrb.mxu2 %v250_v52  ;;  %352 = vmatpush.bf16.msrb.mxu3 %v253_v53  ;;  %v2355_v18 = vld [vmem:[#allocation7 + $0x1f8] sm:$0xf]  ;;  %v2260_v20 = vor.u32 %v2918_v15, %v2259_v14  ;;  %v2942_v21 = vld [vmem:[#allocation7 + $0x200] sm:$0xf0]  ;;  %v2891_v25 = vld [vmem:[#allocation7 + $0x68] sm:$0xf0] }
  0x2f   :  { %v2451_v22 = vld [vmem:[#allocation7 + $0x2b8] sm:$0xf]  ;;  %v2966_v23 = vld [vmem:[#allocation7 + $0x2c0] sm:$0xf0]  ;;  %v2247_v26 = vld [vmem:[#allocation7 + $0x120] sm:$0xf]  ;;  %v2356_v28 = vor.u32 %v2942_v21, %v2355_v18  ;;  %v2152_v34 = vor.u32 %v2891_v25, %v2151_v24 }
  0x30   :  { %314 = vmatpush.bf16.msrb.mxu0 %v2080_v54  ;;  %327 = vmatpush.bf16.msrb.mxu1 %v2084_v55  ;;  %v2915_v27 = vld [vmem:[#allocation7 + $0x128] sm:$0xf0]  ;;  %v2452_v29 = vor.u32 %v2966_v23, %v2451_v22  ;;  %v2343_v30 = vld [vmem:[#allocation7 + $0x1e0] sm:$0xf]  ;;  %v2139_v36 = vld [vmem:[#allocation7 + $0x48] sm:$0xf] }
  0x31   :  { %v2939_v31 = vld [vmem:[#allocation7 + $0x1e8] sm:$0xf0]  ;;  %v2439_v32 = vld [vmem:[#allocation7 + $0x2a0] sm:$0xf]  ;;  %v2248_v35 = vor.u32 %v2915_v27, %v2247_v26  ;;  %v2888_v37 = vld [vmem:[#allocation7 + $0x50] sm:$0xf0] }
  0x32   :  { %340 = vmatpush.bf16.msrb.mxu2 %v2088_v2  ;;  %353 = vmatpush.bf16.msrb.mxu3 %v2092_v3  ;;  %v2963_v33 = vld [vmem:[#allocation7 + $0x2a8] sm:$0xf0]  ;;  %v2235_v38 = vld [vmem:[#allocation7 + $0x108] sm:$0xf]  ;;  %v2912_v39 = vld [vmem:[#allocation7 + $0x110] sm:$0xf0]  ;;  %v2344_v40 = vor.u32 %v2939_v31, %v2343_v30  ;;  %v2140_v47 = vor.u32 %v2888_v37, %v2139_v36 }
  0x33   :  { %v2440_v42 = vor.u32 %v2963_v33, %v2439_v32  ;;  %v2331_v43 = vld [vmem:[#allocation7 + $0x1c8] sm:$0xf]  ;;  %v2936_v44 = vld [vmem:[#allocation7 + $0x1d0] sm:$0xf0]  ;;  %v2236_v48 = vor.u32 %v2912_v39, %v2235_v38  ;;  %v2127_v49 = vld [vmem:[#allocation7 + $0x30] sm:$0xf] }
  0x34   :  { %1033 = vmatpush.bf16.msra.mxu0 %v2188_v58  ;;  %1046 = vmatpush.bf16.msra.mxu1 %v2284_v59  ;;  %v2427_v45 = vld [vmem:[#allocation7 + $0x288] sm:$0xf]  ;;  %v2960_v46 = vld [vmem:[#allocation7 + $0x290] sm:$0xf0]  ;;  %v2885_v50 = vld [vmem:[#allocation7 + $0x38] sm:$0xf0]  ;;  %v2332_v53 = vor.u32 %v2936_v44, %v2331_v43 }
  0x35   :  { %v2223_v51 = vld [vmem:[#allocation7 + $0xf0] sm:$0xf]  ;;  %v2909_v52 = vld [vmem:[#allocation7 + $0xf8] sm:$0xf0]  ;;  %v2428_v54 = vor.u32 %v2960_v46, %v2427_v45  ;;  %v2128_v59 = vor.u32 %v2885_v50, %v2127_v49  ;;  %v2115_v60 = vld [vmem:[#allocation7 + $0x18] sm:$0xf] }
  0x36   :  { %1059 = vmatpush.bf16.msra.mxu2 %v2380_v4  ;;  %1072 = vmatpush.bf16.msra.mxu3 %v2476_v5  ;;  %v2319_v55 = vld [vmem:[#allocation7 + $0x1b0] sm:$0xf]  ;;  %v2933_v56 = vld [vmem:[#allocation7 + $0x1b8] sm:$0xf0]  ;;  %v2882_v61 = vld [vmem:[#allocation7 + $0x20] sm:$0xf0] }
  0x37   :  { %v2415_v57 = vld [vmem:[#allocation7 + $0x270] sm:$0xf]  ;;  %v2957_v58 = vld [vmem:[#allocation7 + $0x278] sm:$0xf0]  ;;  %v2211_v62 = vld [vmem:[#allocation7 + $0xd8] sm:$0xf]  ;;  %v2320_v0 = vor.u32 %v2933_v56, %v2319_v55 }
  0x38   :  { %1034 = vmatpush.bf16.msra.mxu0 %v2176_v8  ;;  %1047 = vmatpush.bf16.msra.mxu1 %v2272_v9  ;;  %v2906_v63 = vld [vmem:[#allocation7 + $0xe0] sm:$0xf0]  ;;  %v2416_v1 = vor.u32 %v2957_v58, %v2415_v57  ;;  %v2307_v2 = vld [vmem:[#allocation7 + $0x198] sm:$0xf]  ;;  %v2103_v6 = vld [vmem:[#allocation7] sm:$0xf]  ;;  %v2116_v8 = vor.u32 %v2882_v61, %v2115_v60 }
  0x39   :  { %v2930_v3 = vld [vmem:[#allocation7 + $0x1a0] sm:$0xf0]  ;;  %v2403_v4 = vld [vmem:[#allocation7 + $0x258] sm:$0xf]  ;;  %v2879_v7 = vld [vmem:[#allocation7 + $0x8] sm:$0xf0]  ;;  %v2212_v9 = vor.u32 %v2906_v63, %v2211_v62 }
  0x3a   :  { %1060 = vmatpush.bf16.msra.mxu2 %v2368_v16  ;;  %1073 = vmatpush.bf16.msra.mxu3 %v2464_v17  ;;  %v2954_v5 = vld [vmem:[#allocation7 + $0x260] sm:$0xf0]  ;;  %v2199_v10 = vld [vmem:[#allocation7 + $0xc0] sm:$0xf]  ;;  %v2903_v11 = vld [vmem:[#allocation7 + $0xc8] sm:$0xf0]  ;;  %v2308_v16 = vor.u32 %v2930_v3, %v2307_v2  ;;  %v2104_v23 = vor.u32 %v2879_v7, %v2103_v6 }
  0x3b   :  { %2097 = vmatmul.msk.bf16.vlgmr.msrb.gmra.mxu0 %vm226_vm1, %v3344_v41  ;;  %2098 = vmatmul.msk.bf16.vlgmr.msrb.gmra.mxu1 %vm226_vm1, %v3344_v41  ;;  %v2899_v12 = vld [vmem:[#allocation7 + $0xac] sm:$0xf]  ;;  %v2189_v13 = vld [vmem:[#allocation7 + $0xb4] sm:$0xf0]  ;;  %v2404_v17 = vor.u32 %v2954_v5, %v2403_v4  ;;  %v2295_v18 = vld [vmem:[#allocation7 + $0x180] sm:$0xf]  ;;  %v2200_v24 = vor.u32 %v2903_v11, %v2199_v10 }
  0x3c   :  { %1035 = vmatpush.bf16.msra.mxu0 %v2164_v19  ;;  %1048 = vmatpush.bf16.msra.mxu1 %v2260_v20  ;;  %v2923_v14 = vld [vmem:[#allocation7 + $0x16c] sm:$0xf]  ;;  %v2285_v15 = vld [vmem:[#allocation7 + $0x174] sm:$0xf0]  ;;  %v2391_v20 = vld [vmem:[#allocation7 + $0x240] sm:$0xf] }
  0x3d   :  { %2099 = vmatmul.msk.bf16.vlgmr.msrb.gmra.mxu2 %vm226_vm1, %v3344_v41  ;;  %2100 = vmatmul.msk.bf16.vlgmr.msrb.gmra.mxu3 %vm226_vm1, %v3344_v41  ;;  %v2224_v41 = vor.u32 %v2909_v52, %v2223_v51  ;;  %v2927_v19 = vld [vmem:[#allocation7 + $0x188] sm:$0xf0]  ;;  %v2381_v25 = vld [vmem:[#allocation7 + $0x234] sm:$0xf0]  ;;  %v2896_v30 = vld [vmem:[#allocation7 + $0x94] sm:$0xf] }
  0x3e   :  { %1061 = vmatpush.bf16.msra.mxu2 %v2356_v28  ;;  %1074 = vmatpush.bf16.msra.mxu3 %v2452_v29  ;;  %v2951_v21 = vld [vmem:[#allocation7 + $0x248] sm:$0xf0]  ;;  %v2477_v27 = vld [vmem:[#allocation7 + $0x2f4] sm:$0xf0]  ;;  %v2192_v28 = vor.u32 %v2899_v12, %v2189_v13  ;;  %v2288_v29 = vor.u32 %v2923_v14, %v2285_v15  ;;  %v2177_v31 = vld [vmem:[#allocation7 + $0x9c] sm:$0xf0] }
  0x3f   :  { %v2947_v22 = vld [vmem:[#allocation7 + $0x22c] sm:$0xf]  ;;  %v2920_v32 = vld [vmem:[#allocation7 + $0x154] sm:$0xf]  ;;  %v2273_v33 = vld [vmem:[#allocation7 + $0x15c] sm:$0xf0]  ;;  %v2180_v43 = vor.u32 %v2896_v30, %v2177_v31 }
  0x40   :  { %1036 = vmatpush.bf16.msra.mxu0 %v2152_v34  ;;  %1049 = vmatpush.bf16.msra.mxu1 %v2248_v35  ;;  %v2971_v26 = vld [vmem:[#allocation7 + $0x2ec] sm:$0xf]  ;;  %v2296_v34 = vor.u32 %v2927_v19, %v2295_v18  ;;  %v2392_v35 = vor.u32 %v2951_v21, %v2391_v20  ;;  %v2384_v36 = vor.u32 %v2947_v22, %v2381_v25  ;;  %v2944_v38 = vld [vmem:[#allocation7 + $0x214] sm:$0xf]  ;;  %v2369_v39 = vld [vmem:[#allocation7 + $0x21c] sm:$0xf0] }
  0x41   :  { %v2480_v37 = vor.u32 %v2971_v26, %v2477_v27  ;;  %v2276_v44 = vor.u32 %v2920_v32, %v2273_v33  ;;  %v2893_v45 = vld [vmem:[#allocation7 + $0x7c] sm:$0xf]  ;;  %v2165_v46 = vld [vmem:[#allocation7 + $0x84] sm:$0xf0]  ;;  %v2372_v49 = vor.u32 %v2944_v38, %v2369_v39  ;;  %v2890_v57 = vld [vmem:[#allocation7 + $0x64] sm:$0xf] }
  0x42   :  { %1062 = vmatpush.bf16.msra.mxu2 %v2344_v40  ;;  %1075 = vmatpush.bf16.msra.mxu3 %v2440_v42  ;;  %v2968_v40 = vld [vmem:[#allocation7 + $0x2d4] sm:$0xf]  ;;  %v2465_v42 = vld [vmem:[#allocation7 + $0x2dc] sm:$0xf0]  ;;  %v2941_v51 = vld [vmem:[#allocation7 + $0x1fc] sm:$0xf]  ;;  %v2168_v55 = vor.u32 %v2893_v45, %v2165_v46 }
  0x43   :  { %v2468_v50 = vor.u32 %v2968_v40, %v2465_v42  ;;  %v2357_v52 = vld [vmem:[#allocation7 + $0x204] sm:$0xf0]  ;;  %v2153_v58 = vld [vmem:[#allocation7 + $0x6c] sm:$0xf0]  ;;  %v2911_v2 = vld [vmem:[#allocation7 + $0x10c] sm:$0xf] }
  0x44   :  { %1037 = vmatpush.bf16.msra.mxu0 %v2140_v47  ;;  %1050 = vmatpush.bf16.msra.mxu1 %v2236_v48  ;;  %v2917_v47 = vld [vmem:[#allocation7 + $0x13c] sm:$0xf]  ;;  %v2261_v48 = vld [vmem:[#allocation7 + $0x144] sm:$0xf0]  ;;  %v2360_v60 = vor.u32 %v2941_v51, %v2357_v52  ;;  %v2156_v62 = vor.u32 %v2890_v57, %v2153_v58  ;;  %v2237_v3 = vld [vmem:[#allocation7 + $0x114] sm:$0xf0] }
  0x45   :  { %v2264_v56 = vor.u32 %v2917_v47, %v2261_v48  ;;  %v2240_v5 = vor.u32 %v2911_v2, %v2237_v3  ;;  %v2938_v6 = vld [vmem:[#allocation7 + $0x1e4] sm:$0xf]  ;;  %v2345_v7 = vld [vmem:[#allocation7 + $0x1ec] sm:$0xf0]  ;;  %v2884_v12 = vld [vmem:[#allocation7 + $0x34] sm:$0xf] }
  0x46   :  { %1063 = vmatpush.bf16.msra.mxu2 %v2332_v53  ;;  %1076 = vmatpush.bf16.msra.mxu3 %v2428_v54  ;;  %v2965_v53 = vld [vmem:[#allocation7 + $0x2bc] sm:$0xf]  ;;  %v2453_v54 = vld [vmem:[#allocation7 + $0x2c4] sm:$0xf0]  ;;  %v2441_v10 = vld [vmem:[#allocation7 + $0x2ac] sm:$0xf0] }
  0x47   :  { %v2456_v61 = vor.u32 %v2965_v53, %v2453_v54  ;;  %v2129_v13 = vld [vmem:[#allocation7 + $0x3c] sm:$0xf0]  ;;  %v2908_v15 = vld [vmem:[#allocation7 + $0xf4] sm:$0xf]  ;;  %v2935_v18 = vld [vmem:[#allocation7 + $0x1cc] sm:$0xf] }
  0x48   :  { %1038 = vmatpush.bf16.msra.mxu0 %v2128_v59  ;;  %1051 = vmatpush.bf16.msra.mxu1 %v2224_v41  ;;  %v2914_v59 = vld [vmem:[#allocation7 + $0x124] sm:$0xf]  ;;  %v2249_v41 = vld [vmem:[#allocation7 + $0x12c] sm:$0xf0]  ;;  %v2132_v14 = vor.u32 %v2884_v12, %v2129_v13  ;;  %v2333_v19 = vld [vmem:[#allocation7 + $0x1d4] sm:$0xf0] }
  0x49   :  { %v2252_v63 = vor.u32 %v2914_v59, %v2249_v41  ;;  %v2959_v20 = vld [vmem:[#allocation7 + $0x28c] sm:$0xf]  ;;  %v2336_v21 = vor.u32 %v2935_v18, %v2333_v19  ;;  %v2429_v22 = vld [vmem:[#allocation7 + $0x294] sm:$0xf0]  ;;  %v2117_v25 = vld [vmem:[#allocation7 + $0x24] sm:$0xf0] }
  0x4a   :  { %1064 = vmatpush.bf16.msra.mxu2 %v2320_v0  ;;  %1077 = vmatpush.bf16.msra.mxu3 %v2416_v1  ;;  %v2887_v0 = vld [vmem:[#allocation7 + $0x4c] sm:$0xf]  ;;  %v2141_v1 = vld [vmem:[#allocation7 + $0x54] sm:$0xf0]  ;;  %v2905_v26 = vld [vmem:[#allocation7 + $0xdc] sm:$0xf] }
  0x4b   :  { %v2144_v4 = vor.u32 %v2887_v0, %v2141_v1  ;;  %v2932_v30 = vld [vmem:[#allocation7 + $0x1b4] sm:$0xf]  ;;  %v2321_v31 = vld [vmem:[#allocation7 + $0x1bc] sm:$0xf0]  ;;  %v2902_v38 = vld [vmem:[#allocation7 + $0xc4] sm:$0xf] }
  0x4c   :  { %1039 = vmatpush.bf16.msra.mxu0 %v2116_v8  ;;  %1052 = vmatpush.bf16.msra.mxu1 %v2212_v9  ;;  %v2962_v8 = vld [vmem:[#allocation7 + $0x2a4] sm:$0xf]  ;;  %v2348_v9 = vor.u32 %v2938_v6, %v2345_v7  ;;  %v2324_v32 = vor.u32 %v2932_v30, %v2321_v31  ;;  %v2956_v33 = vld [vmem:[#allocation7 + $0x274] sm:$0xf]  ;;  %v2201_v40 = vld [vmem:[#allocation7 + $0xcc] sm:$0xf0] }
  0x4d   :  { %v2444_v11 = vor.u32 %v2962_v8, %v2441_v10  ;;  %v2204_v42 = vor.u32 %v2902_v38, %v2201_v40  ;;  %v2953_v45 = vld [vmem:[#allocation7 + $0x25c] sm:$0xf]  ;;  %v2405_v46 = vld [vmem:[#allocation7 + $0x264] sm:$0xf0]  ;;  %v2950_v52 = vld [vmem:[#allocation7 + $0x244] sm:$0xf] }
  0x4e   :  { %1065 = vmatpush.bf16.msra.mxu2 %v2308_v16  ;;  %1078 = vmatpush.bf16.msra.mxu3 %v2404_v17  ;;  %v2225_v16 = vld [vmem:[#allocation7 + $0xfc] sm:$0xf0]  ;;  %v2408_v48 = vor.u32 %v2953_v45, %v2405_v46  ;;  %v2393_v53 = vld [vmem:[#allocation7 + $0x24c] sm:$0xf0]  ;;  %v2901_v3 = vld [vmem:[#allocation7 + $0xb8] sm:$0xf0] }
  0x4f   :  { %v2228_v17 = vor.u32 %v2908_v15, %v2225_v16  ;;  %v2396_v54 = vor.u32 %v2950_v52, %v2393_v53  ;;  %v2195_v1 = vld [vmem:[#allocation7 + $0xb0] sm:$0xf]  ;;  %v2183_v16 = vld [vmem:[#allocation7 + $0x98] sm:$0xf]  ;;  %v2898_v19 = vld [vmem:[#allocation7 + $0xa0] sm:$0xf0] }
  0x50   :  { %1040 = vmatpush.bf16.msra.mxu0 %v2104_v23  ;;  %1053 = vmatpush.bf16.msra.mxu1 %v2200_v24  ;;  %v2432_v23 = vor.u32 %v2959_v20, %v2429_v22  ;;  %v2881_v24 = vld [vmem:[#allocation7 + $0x1c] sm:$0xf]  ;;  %v2279_v20 = vld [vmem:[#allocation7 + $0x158] sm:$0xf]  ;;  %v2171_v31 = vld [vmem:[#allocation7 + $0x80] sm:$0xf] }
  0x51   :  { %v2120_v27 = vor.u32 %v2881_v24, %v2117_v25  ;;  %v2387_v24 = vld [vmem:[#allocation7 + $0x230] sm:$0xf]  ;;  %v2949_v25 = vld [vmem:[#allocation7 + $0x238] sm:$0xf0]  ;;  %v2255_v52 = vld [vmem:[#allocation7 + $0x128] sm:$0xf] }
  0x52   :  { %1066 = vmatpush.bf16.msra.mxu2 %v2296_v34  ;;  %1079 = vmatpush.bf16.msra.mxu3 %v2392_v35  ;;  %v2417_v34 = vld [vmem:[#allocation7 + $0x27c] sm:$0xf0]  ;;  %v2973_v30 = vld [vmem:[#allocation7 + $0x2f8] sm:$0xf0]  ;;  %v2916_v53 = vld [vmem:[#allocation7 + $0x130] sm:$0xf0] }
  0x53   :  { %v2420_v35 = vor.u32 %v2956_v33, %v2417_v34  ;;  %v2267_v33 = vld [vmem:[#allocation7 + $0x140] sm:$0xf]  ;;  %v2919_v34 = vld [vmem:[#allocation7 + $0x148] sm:$0xf0]  ;;  %vm2044_vm2 = vcmask 7168   ;;  %vm2051_vm3 = vcmask 15360  }
  0x54   :  { %1085 = vmatpush.bf16.msrb.mxu0 %v2192_v28  ;;  %1098 = vmatpush.bf16.msrb.mxu1 %v2288_v29  ;;  %v2213_v28 = vld [vmem:[#allocation7 + $0xe4] sm:$0xf0] }
  0x55   :  { %v2216_v29 = vor.u32 %v2905_v26, %v2213_v28  ;;  %v2483_v26 = vld [vmem:[#allocation7 + $0x2f0] sm:$0xf]  ;;  %v2184_v28 = vor.u32 %v2898_v19, %v2183_v16  ;;  %v2937_v19 = vld [vmem:[#allocation7 + $0x1d8] sm:$0xf0] }
  0x56   :  { %1111 = vmatpush.bf16.msrb.mxu2 %v2384_v36  ;;  %1124 = vmatpush.bf16.msrb.mxu3 %v2480_v37  ;;  %v2878_v36 = vld [vmem:[#allocation7 + $0x4] sm:$0xf]  ;;  %v2105_v37 = vld [vmem:[#allocation7 + $0xc] sm:$0xf0]  ;;  %v2484_v40 = vor.u32 %v2973_v30, %v2483_v26  ;;  %v2219_v26 = vld [vmem:[#allocation7 + $0xe0] sm:$0xf] }
  0x57   :  { %v2108_v39 = vor.u32 %v2878_v36, %v2105_v37  ;;  %v2339_v16 = vld [vmem:[#allocation7 + $0x1d0] sm:$0xf]  ;;  %v2327_v30 = vld [vmem:[#allocation7 + $0x1b8] sm:$0xf] }
  0x58   :  { %1086 = vmatpush.bf16.msrb.mxu0 %v2180_v43  ;;  %1099 = vmatpush.bf16.msrb.mxu1 %v2276_v44  ;;  %v2929_v43 = vld [vmem:[#allocation7 + $0x19c] sm:$0xf]  ;;  %v2309_v44 = vld [vmem:[#allocation7 + $0x1a4] sm:$0xf0] }
  0x59   :  { %v2312_v47 = vor.u32 %v2929_v43, %v2309_v44  ;;  %v2375_v43 = vld [vmem:[#allocation7 + $0x218] sm:$0xf]  ;;  %v2946_v44 = vld [vmem:[#allocation7 + $0x220] sm:$0xf0] }
  0x5a   :  { %1112 = vmatpush.bf16.msrb.mxu2 %v2372_v49  ;;  %1125 = vmatpush.bf16.msrb.mxu3 %v2468_v50  ;;  %v2926_v49 = vld [vmem:[#allocation7 + $0x184] sm:$0xf]  ;;  %v2297_v50 = vld [vmem:[#allocation7 + $0x18c] sm:$0xf0] }
  0x5b   :  { %v2300_v51 = vor.u32 %v2926_v49, %v2297_v50  ;;  %v2970_v49 = vld [vmem:[#allocation7 + $0x2e0] sm:$0xf0]  ;;  %v2159_v50 = vld [vmem:[#allocation7 + $0x68] sm:$0xf] }
  0x5c   :  { %1087 = vmatpush.bf16.msrb.mxu0 %v2168_v55  ;;  %1100 = vmatpush.bf16.msrb.mxu1 %v2264_v56  ;;  %v3366_v55 = vld [vmem:[#allocation6] sm:$0xff] }
  0x5d   :  { %v150_v56 = vperm.slane %v3366_v55, 0  ;;  %v151_v57 = vperm.slane %v3366_v55, 1  ;;  %v153_v0 = vperm.slane %v3366_v55, 3 }
  0x5e   :  { %1113 = vmatpush.bf16.msrb.mxu2 %v2360_v60  ;;  %1126 = vmatpush.bf16.msrb.mxu3 %v2456_v61 }
  0x60   :  { %1088 = vmatpush.bf16.msrb.mxu0 %v2156_v62  ;;  %1101 = vmatpush.bf16.msrb.mxu1 %v2252_v63  ;;  %v152_v63 = vperm.slane %v3366_v55, 2 }
  0x62   :  { %1114 = vmatpush.bf16.msrb.mxu2 %v2348_v9  ;;  %1127 = vmatpush.bf16.msrb.mxu3 %v2444_v11 }
  0x64   :  { %1089 = vmatpush.bf16.msrb.mxu0 %v2144_v4  ;;  %1102 = vmatpush.bf16.msrb.mxu1 %v2240_v5  ;;  %v2291_v4 = vld [vmem:[#allocation7 + $0x170] sm:$0xf]  ;;  %v2925_v5 = vld [vmem:[#allocation7 + $0x178] sm:$0xf0] }
  0x65   :  { %v2292_v15 = vor.u32 %v2925_v5, %v2291_v4  ;;  %v2351_v4 = vld [vmem:[#allocation7 + $0x1e8] sm:$0xf]  ;;  %v2940_v5 = vld [vmem:[#allocation7 + $0x1f0] sm:$0xf0] }
  0x66   :  { %1115 = vmatpush.bf16.msrb.mxu2 %v2336_v21  ;;  %1128 = vmatpush.bf16.msrb.mxu3 %v2432_v23  ;;  %v2922_v21 = vld [vmem:[#allocation7 + $0x160] sm:$0xf0] }
  0x68   :  { %1090 = vmatpush.bf16.msrb.mxu0 %v2132_v14  ;;  %1103 = vmatpush.bf16.msrb.mxu1 %v2228_v17  ;;  %v2196_v14 = vor.u32 %v2901_v3, %v2195_v1  ;;  %v2913_v1 = vld [vmem:[#allocation7 + $0x118] sm:$0xf0] }
  0x6a   :  { %1116 = vmatpush.bf16.msrb.mxu2 %v2324_v32  ;;  %1129 = vmatpush.bf16.msrb.mxu3 %v2420_v35  ;;  %v2895_v32 = vld [vmem:[#allocation7 + $0x88] sm:$0xf0] }
  0x6c   :  { %1091 = vmatpush.bf16.msrb.mxu0 %v2120_v27  ;;  %1104 = vmatpush.bf16.msrb.mxu1 %v2216_v29  ;;  %v2280_v29 = vor.u32 %v2922_v21, %v2279_v20  ;;  %v2435_v20 = vld [vmem:[#allocation7 + $0x290] sm:$0xf]  ;;  %v2961_v21 = vld [vmem:[#allocation7 + $0x298] sm:$0xf0] }
  0x6e   :  { %1117 = vmatpush.bf16.msrb.mxu2 %v2312_v47  ;;  %1130 = vmatpush.bf16.msrb.mxu3 %v2408_v48  ;;  %v2268_v47 = vor.u32 %v2919_v34, %v2267_v33  ;;  %v2471_v48 = vld [vmem:[#allocation7 + $0x2d8] sm:$0xf]  ;;  %v2958_v33 = vld [vmem:[#allocation7 + $0x280] sm:$0xf0] }
  0x70   :  { %1092 = vmatpush.bf16.msrb.mxu0 %v2108_v39  ;;  %1105 = vmatpush.bf16.msrb.mxu1 %v2204_v42  ;;  %v2388_v39 = vor.u32 %v2949_v25, %v2387_v24  ;;  %v2172_v42 = vor.u32 %v2895_v32, %v2171_v31  ;;  %v2123_v24 = vld [vmem:[#allocation7 + $0x20] sm:$0xf]  ;;  %v2883_v25 = vld [vmem:[#allocation7 + $0x28] sm:$0xf0]  ;;  %v2934_v31 = vld [vmem:[#allocation7 + $0x1c0] sm:$0xf0] }
  0x71   :  { %v2423_v32 = vld [vmem:[#allocation7 + $0x278] sm:$0xf]  ;;  %v2124_v34 = vor.u32 %v2883_v25, %v2123_v24  ;;  %v3065_v24 = vld [vmem:[#allocation10 + $0x2d8] sm:$0xf0] }
  0x72   :  { %1118 = vmatpush.bf16.msrb.mxu2 %v2300_v51  ;;  %1131 = vmatpush.bf16.msrb.mxu3 %v2396_v54  ;;  %v2892_v51 = vld [vmem:[#allocation7 + $0x70] sm:$0xf0]  ;;  %v2376_v54 = vor.u32 %v2946_v44, %v2375_v43  ;;  %v2328_v43 = vor.u32 %v2934_v31, %v2327_v30  ;;  %v2424_v44 = vor.u32 %v2958_v33, %v2423_v32  ;;  %v3011_v30 = vld [vmem:[#allocation10 + $0x128] sm:$0xf0]  ;;  %v2739_v33 = vld [vmem:[#allocation10 + $0x1f8] sm:$0xf] }
  0xa8   :  { %v264_v58 = vpop.f32.mrf.mxu0  ;;  %v277_v59 = vpop.f32.mrf.mxu1 }
  0xa9   :  { %v265_v41 = vadd.f32 %v264_v58, %v150_v56  ;;  %v278_v60 = vadd.f32 %v277_v59, %v151_v57  ;;  %v2472_v56 = vor.u32 %v2970_v49, %v2471_v48  ;;  %v2363_v57 = vld [vmem:[#allocation7 + $0x200] sm:$0xf]  ;;  %v2160_v58 = vor.u32 %v2892_v51, %v2159_v50  ;;  %v3020_v48 = vld [vmem:[#allocation10 + $0x170] sm:$0xf0]  ;;  %v2931_v50 = vld [vmem:[#allocation7 + $0x1a8] sm:$0xf0] }
  0xaa   :  { %v2256_v59 = vor.u32 %v2916_v53, %v2255_v52  ;;  %v2315_v49 = vld [vmem:[#allocation7 + $0x1a0] sm:$0xf]  ;;  %v2955_v52 = vld [vmem:[#allocation7 + $0x268] sm:$0xf0] }
  0xab   :  { %v359_v61 = vmax.f32 %v265_v41, 0.0  ;;  %v360_v62 = vmax.f32 %v278_v60, 0.0  ;;  %v2943_v41 = vld [vmem:[#allocation7 + $0x208] sm:$0xf0]  ;;  %v2459_v60 = vld [vmem:[#allocation7 + $0x2c0] sm:$0xf] }
  0xac   :  { %v2411_v51 = vld [vmem:[#allocation7 + $0x260] sm:$0xf] }
  0xad   :  { %v367_v2 = vpack.c.bf16 %v360_v62, %v359_v61  ;;  %v2967_v61 = vld [vmem:[#allocation7 + $0x2c8] sm:$0xf0]  ;;  %v2147_v62 = vld [vmem:[#allocation7 + $0x50] sm:$0xf] }
  0xae   :  { %v2460_v3 = vor.u32 %v2967_v61, %v2459_v60  ;;  %v2316_v60 = vor.u32 %v2931_v50, %v2315_v49  ;;  %v2412_v61 = vor.u32 %v2955_v52, %v2411_v51  ;;  %v3008_v49 = vld [vmem:[#allocation10 + $0x110] sm:$0xf0]  ;;  %v2727_v52 = vld [vmem:[#allocation10 + $0x1e0] sm:$0xf] }
  0xaf   :  { %v509_v6 = vunpack.c.l.b16 %v367_v2  ;;  %v510_v7 = vunpack.c.h.b16 %v367_v2  ;;  %v2364_v2 = vor.u32 %v2943_v41, %v2363_v57  ;;  %v2655_v41 = vld [vmem:[#allocation10 + $0x150] sm:$0xf] }
  0xb0   :  { %v290_v8 = vpop.f32.mrf.mxu2  ;;  %v303_v9 = vpop.f32.mrf.mxu3 }
  0xb1   :  { %v291_v10 = vadd.f32 %v290_v8, %v152_v63  ;;  %v304_v11 = vadd.f32 %v303_v9, %v153_v0  ;;  %v266_v12 = vpop.f32.mrf.mxu0  ;;  %v279_v13 = vpop.f32.mrf.mxu1  ;;  %v3372_v17 = vpack.c.b16 %v509_v6, %v509_v6  ;;  %v3374_v18 = vpack.c.b16 %v510_v7, %v510_v7  ;;  %v2889_v63 = vld [vmem:[#allocation7 + $0x58] sm:$0xf0]  ;;  %v2243_v0 = vld [vmem:[#allocation7 + $0x110] sm:$0xf]  ;;  %v2447_v6 = vld [vmem:[#allocation7 + $0x2a8] sm:$0xf] }
  0xb2   :  { %v2964_v7 = vld [vmem:[#allocation7 + $0x2b0] sm:$0xf0]  ;;  %v2148_v8 = vor.u32 %v2889_v63, %v2147_v62  ;;  %v2244_v9 = vor.u32 %v2913_v1, %v2243_v0  ;;  %v2231_v12 = vld [vmem:[#allocation7 + $0xf8] sm:$0xf]  ;;  %v2910_v13 = vld [vmem:[#allocation7 + $0x100] sm:$0xf0] }
  0xb3   :  { %v361_v22 = vmax.f32 %v291_v10, 0.0  ;;  %v362_v23 = vmax.f32 %v304_v11, 0.0  ;;  %1041 = vmatmul.bf16.vlgmr.msra.gmra.mxu0 %v3372_v17  ;;  %1054 = vmatmul.bf16.vlgmr.msra.gmra.mxu1 %v3374_v18  ;;  %v2135_v10 = vld [vmem:[#allocation7 + $0x38] sm:$0xf]  ;;  %v2886_v11 = vld [vmem:[#allocation7 + $0x40] sm:$0xf0] }
  0xb4   :  { %1137 = vmatpush.bf16.msra.mxu0 %v2196_v14  ;;  %1150 = vmatpush.bf16.msra.mxu1 %v2292_v15  ;;  %v2352_v14 = vor.u32 %v2940_v5, %v2351_v4  ;;  %v2448_v15 = vor.u32 %v2964_v7, %v2447_v6  ;;  %v3017_v62 = vld [vmem:[#allocation10 + $0x158] sm:$0xf0]  ;;  %v2303_v63 = vld [vmem:[#allocation7 + $0x188] sm:$0xf]  ;;  %v2928_v0 = vld [vmem:[#allocation7 + $0x190] sm:$0xf0] }
  0xb5   :  { %v368_v27 = vpack.c.bf16 %v362_v23, %v361_v22  ;;  %v2136_v22 = vor.u32 %v2886_v11, %v2135_v10  ;;  %v2232_v23 = vor.u32 %v2910_v13, %v2231_v12  ;;  %v2399_v1 = vld [vmem:[#allocation7 + $0x248] sm:$0xf]  ;;  %v3044_v6 = vld [vmem:[#allocation10 + $0x230] sm:$0xf0]  ;;  %v2859_v7 = vld [vmem:[#allocation10 + $0x2e8] sm:$0xf]  ;;  %v2656_v10 = vor.u32 %v3017_v62, %v2655_v41 }
  0xb6   :  { %v2547_v11 = vld [vmem:[#allocation10 + $0x78] sm:$0xf]  ;;  %v2304_v12 = vor.u32 %v2928_v0, %v2303_v63  ;;  %v2981_v41 = vld [vmem:[#allocation10 + $0x38] sm:$0xf0] }
  0xb7   :  { %v511_v35 = vunpack.c.l.b16 %v368_v27  ;;  %v512_v36 = vunpack.c.h.b16 %v368_v27  ;;  %v2907_v27 = vld [vmem:[#allocation7 + $0xe8] sm:$0xf0] }
  0xb8   :  { %v292_v37 = vpop.f32.mrf.mxu2  ;;  %v305_v38 = vpop.f32.mrf.mxu3  ;;  %1138 = vmatpush.bf16.msra.mxu0 %v2184_v28  ;;  %1151 = vmatpush.bf16.msra.mxu1 %v2280_v29  ;;  %v2340_v28 = vor.u32 %v2937_v19, %v2339_v16  ;;  %v2436_v29 = vor.u32 %v2961_v21, %v2435_v20  ;;  %v3014_v16 = vld [vmem:[#allocation10 + $0x140] sm:$0xf0]  ;;  %v2751_v21 = vld [vmem:[#allocation10 + $0x210] sm:$0xf] }
  0xb9   :  { %v3378_v45 = vpack.c.b16 %v511_v35, %v511_v35  ;;  %v3380_v46 = vpack.c.b16 %v512_v36, %v512_v36  ;;  %v2220_v35 = vor.u32 %v2907_v27, %v2219_v26  ;;  %v2111_v36 = vld [vmem:[#allocation7 + $0x8] sm:$0xf]  ;;  %v2880_v37 = vld [vmem:[#allocation7 + $0x10] sm:$0xf0]  ;;  %v3388_v4 = vpop.f32.mrf.mxu0  ;;  %v3390_v5 = vpop.f32.mrf.mxu1  ;;  %v2535_v27 = vld [vmem:[#allocation10 + $0x60] sm:$0xf] }
  0xba   :  { %v2207_v38 = vld [vmem:[#allocation7 + $0xc8] sm:$0xf]  ;;  %v2112_v53 = vor.u32 %v2880_v37, %v2111_v36  ;;  %v2835_v37 = vld [vmem:[#allocation10 + $0x2b8] sm:$0xf] }
  0xbb   :  { %1067 = vmatmul.bf16.vlgmr.msra.gmra.mxu2 %v3378_v45  ;;  %1080 = vmatmul.bf16.vlgmr.msra.gmra.mxu3 %v3380_v46 }
  0xbc   :  { %1163 = vmatpush.bf16.msra.mxu2 %v2388_v39  ;;  %1176 = vmatpush.bf16.msra.mxu3 %v2484_v40  ;;  %v2904_v39 = vld [vmem:[#allocation7 + $0xd0] sm:$0xf0]  ;;  %v2571_v40 = vld [vmem:[#allocation10 + $0xa8] sm:$0xf] }
  0xbd   :  { %1139 = vmatpush.bf16.msra.mxu0 %v2172_v42  ;;  %1152 = vmatpush.bf16.msra.mxu1 %v2268_v47  ;;  %v2996_v42 = vld [vmem:[#allocation10 + $0xb0] sm:$0xf0]  ;;  %v2667_v47 = vld [vmem:[#allocation10 + $0x168] sm:$0xf] }
  0xbe   :  { %v2668_v57 = vor.u32 %v3020_v48, %v2667_v47  ;;  %v2984_v47 = vld [vmem:[#allocation10 + $0x50] sm:$0xf0]  ;;  %v2619_v48 = vld [vmem:[#allocation10 + $0x108] sm:$0xf] }
  0xc0   :  { %1164 = vmatpush.bf16.msra.mxu2 %v2376_v54  ;;  %1177 = vmatpush.bf16.msra.mxu3 %v2472_v56  ;;  %v2208_v54 = vor.u32 %v2904_v39, %v2207_v38  ;;  %v2572_v56 = vor.u32 %v2996_v42, %v2571_v40  ;;  %v3394_v31 = vpop.f32.mrf.mxu2  ;;  %v3062_v38 = vld [vmem:[#allocation10 + $0x2c0] sm:$0xf0]  ;;  %v154_v39 = vperm.slane %v3366_v55, 4  ;;  %v155_v40 = vperm.slane %v3366_v55, 5 }
  0xc1   :  { %1140 = vmatpush.bf16.msra.mxu0 %v2160_v58  ;;  %1153 = vmatpush.bf16.msra.mxu1 %v2256_v59  ;;  %v2559_v58 = vld [vmem:[#allocation10 + $0x90] sm:$0xf]  ;;  %v2993_v59 = vld [vmem:[#allocation10 + $0x98] sm:$0xf0]  ;;  %v331_v36 = vpop.f32.mrf.mxu1  ;;  %v2836_v51 = vor.u32 %v3062_v38, %v2835_v37 }
  0xc2   :  { %v2669_v36 = vld [vmem:[#allocation10 + $0x174] sm:$0xf0] }
  0xc3   :  { %1093 = vmatmul.bf16.vlgmr.msrb.gmra.mxu0 %v3372_v17  ;;  %1106 = vmatmul.bf16.vlgmr.msrb.gmra.mxu1 %v3374_v18 }
  0xc4   :  { %1165 = vmatpush.bf16.msra.mxu2 %v2364_v2  ;;  %1178 = vmatpush.bf16.msra.mxu3 %v2460_v3  ;;  %v2952_v2 = vld [vmem:[#allocation7 + $0x250] sm:$0xf0]  ;;  %v2763_v3 = vld [vmem:[#allocation10 + $0x228] sm:$0xf] }
  0xc5   :  { %1141 = vmatpush.bf16.msra.mxu0 %v2148_v8  ;;  %1154 = vmatpush.bf16.msra.mxu1 %v2244_v9  ;;  %v3068_v8 = vld [vmem:[#allocation10 + $0x2f0] sm:$0xf0]  ;;  %v2560_v9 = vor.u32 %v2993_v59, %v2559_v58  ;;  %v2400_v13 = vor.u32 %v2952_v2, %v2399_v1  ;;  %v2764_v19 = vor.u32 %v3044_v6, %v2763_v3  ;;  %v2715_v2 = vld [vmem:[#allocation10 + $0x1c8] sm:$0xf] }
  0xc6   :  { %v2860_v20 = vor.u32 %v3068_v8, %v2859_v7  ;;  %v330_v58 = vadd.f32 %v3390_v5, %v155_v40  ;;  %v2620_v59 = vor.u32 %v3008_v49, %v2619_v48  ;;  %v3032_v3 = vld [vmem:[#allocation10 + $0x1d0] sm:$0xf0]  ;;  %v157_v5 = vperm.slane %v3366_v55, 7  ;;  %v2811_v6 = vld [vmem:[#allocation10 + $0x288] sm:$0xf] }
  0xc7   :  { %v3056_v7 = vld [vmem:[#allocation10 + $0x290] sm:$0xf0]  ;;  %v2787_v40 = vld [vmem:[#allocation10 + $0x258] sm:$0xf] }
  0xc8   :  { %1166 = vmatpush.bf16.msra.mxu2 %v2352_v14  ;;  %1179 = vmatpush.bf16.msra.mxu3 %v2448_v15  ;;  %v2990_v14 = vld [vmem:[#allocation10 + $0x80] sm:$0xf0]  ;;  %v2643_v15 = vld [vmem:[#allocation10 + $0x138] sm:$0xf]  ;;  %v344_v62 = vpop.f32.mrf.mxu2 }
  0xc9   :  { %1142 = vmatpush.bf16.msra.mxu0 %v2136_v22  ;;  %1155 = vmatpush.bf16.msra.mxu1 %v2232_v23  ;;  %v3041_v22 = vld [vmem:[#allocation10 + $0x218] sm:$0xf0]  ;;  %v2847_v23 = vld [vmem:[#allocation10 + $0x2d0] sm:$0xf]  ;;  %v2548_v25 = vor.u32 %v2990_v14, %v2547_v11  ;;  %v2644_v26 = vor.u32 %v3014_v16, %v2643_v15  ;;  %v2978_v14 = vld [vmem:[#allocation10 + $0x20] sm:$0xf0] }
  0xca   :  { %v2848_v32 = vor.u32 %v3065_v24, %v2847_v23  ;;  %v2595_v15 = vld [vmem:[#allocation10 + $0xd8] sm:$0xf]  ;;  %v3002_v16 = vld [vmem:[#allocation10 + $0xe0] sm:$0xf0]  ;;  %v2799_v23 = vld [vmem:[#allocation10 + $0x270] sm:$0xf] }
  0xcb   :  { %1119 = vmatmul.bf16.vlgmr.msrb.gmra.mxu2 %v3378_v45  ;;  %1132 = vmatmul.bf16.vlgmr.msrb.gmra.mxu3 %v3380_v46  ;;  %v3053_v24 = vld [vmem:[#allocation10 + $0x278] sm:$0xf0]  ;;  %v3043_v62 = vld [vmem:[#allocation10 + $0x22c] sm:$0xf] }
  0xcc   :  { %1167 = vmatpush.bf16.msra.mxu2 %v2340_v28  ;;  %1180 = vmatpush.bf16.msra.mxu3 %v2436_v29  ;;  %v2987_v28 = vld [vmem:[#allocation10 + $0x68] sm:$0xf0]  ;;  %v2631_v29 = vld [vmem:[#allocation10 + $0x120] sm:$0xf] }
  0xcd   :  { %1143 = vmatpush.bf16.msra.mxu0 %v2124_v34  ;;  %1156 = vmatpush.bf16.msra.mxu1 %v2220_v35  ;;  %v3038_v34 = vld [vmem:[#allocation10 + $0x200] sm:$0xf0]  ;;  %v318_v35 = vpop.f32.mrf.mxu0  ;;  %v2536_v42 = vor.u32 %v2987_v28, %v2535_v27  ;;  %v2596_v28 = vor.u32 %v3002_v16, %v2595_v15  ;;  %v2753_v15 = vld [vmem:[#allocation10 + $0x21c] sm:$0xf0]  ;;  %v3064_v16 = vld [vmem:[#allocation10 + $0x2d4] sm:$0xf] }
  0xce   :  { %v2740_v50 = vor.u32 %v3038_v34, %v2739_v33  ;;  %v2573_v33 = vld [vmem:[#allocation10 + $0xb4] sm:$0xf0]  ;;  %v3019_v34 = vld [vmem:[#allocation10 + $0x16c] sm:$0xf] }
  0xd0   :  { %1168 = vmatpush.bf16.msra.mxu2 %v2328_v43  ;;  %1181 = vmatpush.bf16.msra.mxu3 %v2424_v44  ;;  %v2632_v43 = vor.u32 %v3011_v30, %v2631_v29  ;;  %v2523_v44 = vld [vmem:[#allocation10 + $0x48] sm:$0xf]  ;;  %v2975_v29 = vld [vmem:[#allocation10 + $0x8] sm:$0xf0]  ;;  %v2583_v30 = vld [vmem:[#allocation10 + $0xc0] sm:$0xf] }
  0xd1   :  { %1144 = vmatpush.bf16.msra.mxu0 %v2112_v53  ;;  %1157 = vmatpush.bf16.msra.mxu1 %v2208_v54  ;;  %v3035_v53 = vld [vmem:[#allocation10 + $0x1e8] sm:$0xf0]  ;;  %v2823_v54 = vld [vmem:[#allocation10 + $0x2a0] sm:$0xf] }
  0xd2   :  { %v2728_v0 = vor.u32 %v3035_v53, %v2727_v52  ;;  %v2561_v52 = vld [vmem:[#allocation10 + $0x9c] sm:$0xf0]  ;;  %v3016_v53 = vld [vmem:[#allocation10 + $0x154] sm:$0xf] }
  0xd4   :  { %1169 = vmatpush.bf16.msra.mxu2 %v2316_v60  ;;  %1182 = vmatpush.bf16.msra.mxu3 %v2412_v61  ;;  %v2607_v60 = vld [vmem:[#allocation10 + $0xf0] sm:$0xf]  ;;  %v3005_v61 = vld [vmem:[#allocation10 + $0xf8] sm:$0xf0] }
  0xd5   :  { %1854 = vmatpush.bf16.msrb.mxu0 %v2572_v56  ;;  %1867 = vmatpush.bf16.msrb.mxu1 %v2668_v57  ;;  %v3059_v56 = vld [vmem:[#allocation10 + $0x2a8] sm:$0xf0]  ;;  %v317_v57 = vadd.f32 %v3388_v4, %v154_v39  ;;  %v156_v4 = vperm.slane %v3366_v55, 6  ;;  %v2608_v11 = vor.u32 %v3005_v61, %v2607_v60  ;;  %v3026_v39 = vld [vmem:[#allocation10 + $0x1a0] sm:$0xf0] }
  0xd6   :  { %1145 = vmatmul.bf16.vlgmr.msra.gmra.mxu0 %v3372_v17  ;;  %1158 = vmatmul.bf16.vlgmr.msra.gmra.mxu1 %v3374_v18  ;;  %v3396_v17 = vpop.f32.mrf.mxu3  ;;  %v2752_v18 = vor.u32 %v3041_v22, %v2751_v21  ;;  %v2824_v1 = vor.u32 %v3059_v56, %v2823_v54  ;;  %v3029_v21 = vld [vmem:[#allocation10 + $0x1b8] sm:$0xf0]  ;;  %v2775_v60 = vld [vmem:[#allocation10 + $0x240] sm:$0xf]  ;;  %v3047_v61 = vld [vmem:[#allocation10 + $0x248] sm:$0xf0] }
  0xd7   :  { %v363_v8 = vmax.f32 %v317_v57, 0.0  ;;  %v343_v55 = vadd.f32 %v3394_v31, %v156_v4  ;;  %v356_v22 = vadd.f32 %v3396_v17, %v157_v5  ;;  %v2800_v31 = vor.u32 %v3053_v24, %v2799_v23  ;;  %v2691_v17 = vld [vmem:[#allocation10 + $0x198] sm:$0xf]  ;;  %v2657_v57 = vld [vmem:[#allocation10 + $0x15c] sm:$0xf0] }
  0xd8   :  { %1170 = vmatpush.bf16.msra.mxu2 %v2304_v12  ;;  %1183 = vmatpush.bf16.msra.mxu3 %v2400_v13  ;;  %v2499_v12 = vld [vmem:[#allocation10 + $0x18] sm:$0xf]  ;;  %v2716_v13 = vor.u32 %v3032_v3, %v2715_v2  ;;  %v2692_v54 = vor.u32 %v3026_v39, %v2691_v17  ;;  %v2660_v3 = vor.u32 %v3016_v53, %v2657_v57  ;;  %v2989_v4 = vld [vmem:[#allocation10 + $0x7c] sm:$0xf]  ;;  %v2537_v24 = vld [vmem:[#allocation10 + $0x6c] sm:$0xf0] }
  0xd9   :  { %1855 = vmatpush.bf16.msrb.mxu0 %v2560_v9  ;;  %1868 = vmatpush.bf16.msrb.mxu1 %v2656_v10  ;;  %v364_v9 = vmax.f32 %v330_v58, 0.0  ;;  %v2500_v27 = vor.u32 %v2978_v14, %v2499_v12  ;;  %v365_v37 = vmax.f32 %v343_v55, 0.0  ;;  %v366_v38 = vmax.f32 %v356_v22, 0.0  ;;  %v2679_v58 = vld [vmem:[#allocation10 + $0x180] sm:$0xf] }
  0xda   :  { %v3040_v14 = vld [vmem:[#allocation10 + $0x214] sm:$0xf]  ;;  %v2986_v55 = vld [vmem:[#allocation10 + $0x64] sm:$0xf]  ;;  %v2621_v17 = vld [vmem:[#allocation10 + $0x114] sm:$0xf0] }
  0xdb   :  { %1171 = vmatmul.bf16.vlgmr.msra.gmra.mxu2 %v3378_v45  ;;  %1184 = vmatmul.bf16.vlgmr.msra.gmra.mxu3 %v3380_v46  ;;  %v2524_v45 = vor.u32 %v2984_v47, %v2523_v44  ;;  %v2511_v46 = vld [vmem:[#allocation10 + $0x30] sm:$0xf]  ;;  %v3034_v39 = vld [vmem:[#allocation10 + $0x1e4] sm:$0xf]  ;;  %v3055_v57 = vld [vmem:[#allocation10 + $0x28c] sm:$0xf] }
  0xdc   :  { %1880 = vmatpush.bf16.msrb.mxu2 %v2764_v19  ;;  %1893 = vmatpush.bf16.msrb.mxu3 %v2860_v20  ;;  %v2512_v10 = vor.u32 %v2981_v41, %v2511_v46  ;;  %v2812_v19 = vor.u32 %v3056_v7, %v2811_v6  ;;  %v2703_v20 = vld [vmem:[#allocation10 + $0x1b0] sm:$0xf]  ;;  %v2776_v6 = vor.u32 %v3047_v61, %v2775_v60  ;;  %v2549_v7 = vld [vmem:[#allocation10 + $0x84] sm:$0xf0]  ;;  %v2977_v60 = vld [vmem:[#allocation10 + $0x1c] sm:$0xf] }
  0xdd   :  { %1856 = vmatpush.bf16.msrb.mxu0 %v2548_v25  ;;  %1869 = vmatpush.bf16.msrb.mxu1 %v2644_v26  ;;  %v2487_v25 = vld [vmem:[#allocation10] sm:$0xf]  ;;  %v369_v26 = vpack.c.bf16 %v364_v9, %v363_v8  ;;  %v2704_v35 = vor.u32 %v3029_v21, %v2703_v20  ;;  %v3013_v8 = vld [vmem:[#allocation10 + $0x13c] sm:$0xf]  ;;  %v2645_v9 = vld [vmem:[#allocation10 + $0x144] sm:$0xf0]  ;;  %v2552_v20 = vor.u32 %v2989_v4, %v2549_v7 }
  0xde   :  { %v357_v63 = vpop.f32.mrf.mxu3  ;;  %v2488_v47 = vor.u32 %v2975_v29, %v2487_v25  ;;  %v2648_v21 = vor.u32 %v3013_v8, %v2645_v9  ;;  %v3010_v25 = vld [vmem:[#allocation10 + $0x124] sm:$0xf]  ;;  %v3037_v29 = vld [vmem:[#allocation10 + $0x1fc] sm:$0xf]  ;;  %v2501_v61 = vld [vmem:[#allocation10 + $0x24] sm:$0xf0] }
  0xdf   :  { %v1331_v44 = vunpack.c.h.b16 %v369_v26  ;;  %v2765_v63 = vld [vmem:[#allocation10 + $0x234] sm:$0xf0]  ;;  %v3052_v4 = vld [vmem:[#allocation10 + $0x274] sm:$0xf]  ;;  %v2974_v8 = vld [vmem:[#allocation10 + $0x4] sm:$0xf] }
  0xe0   :  { %1881 = vmatpush.bf16.msrb.mxu2 %v2752_v18  ;;  %1894 = vmatpush.bf16.msrb.mxu3 %v2848_v32  ;;  %v2999_v18 = vld [vmem:[#allocation10 + $0xc8] sm:$0xf0]  ;;  %v2768_v12 = vor.u32 %v3043_v62, %v2765_v63  ;;  %v3001_v62 = vld [vmem:[#allocation10 + $0xdc] sm:$0xf]  ;;  %v2597_v63 = vld [vmem:[#allocation10 + $0xe4] sm:$0xf0] }
  0xe1   :  { %1857 = vmatpush.bf16.msrb.mxu0 %v2536_v42  ;;  %1870 = vmatpush.bf16.msrb.mxu1 %v2632_v43  ;;  %v2995_v32 = vld [vmem:[#allocation10 + $0xac] sm:$0xf]  ;;  %v3050_v42 = vld [vmem:[#allocation10 + $0x260] sm:$0xf0]  ;;  %v1330_v43 = vunpack.c.l.b16 %v369_v26  ;;  %v2584_v48 = vor.u32 %v2999_v18, %v2583_v30  ;;  %v3410_v41 = vpack.c.b16 %v1331_v44, %v1331_v44  ;;  %v2633_v26 = vld [vmem:[#allocation10 + $0x12c] sm:$0xf0]  ;;  %v2600_v7 = vor.u32 %v3001_v62, %v2597_v63 }
  0xe2   :  { %v2576_v49 = vor.u32 %v2995_v32, %v2573_v33  ;;  %v2788_v56 = vor.u32 %v3050_v42, %v2787_v40  ;;  %v2741_v30 = vld [vmem:[#allocation10 + $0x204] sm:$0xf0]  ;;  %v3061_v18 = vld [vmem:[#allocation10 + $0x2bc] sm:$0xf]  ;;  %v2540_v33 = vor.u32 %v2986_v55, %v2537_v24  ;;  %v2729_v40 = vld [vmem:[#allocation10 + $0x1ec] sm:$0xf0] }
  0xe3   :  { %v3408_v46 = vpack.c.b16 %v1330_v43, %v1330_v43  ;;  %v2837_v32 = vld [vmem:[#allocation10 + $0x2c4] sm:$0xf0]  ;;  %v3058_v42 = vld [vmem:[#allocation10 + $0x2a4] sm:$0xf]  ;;  %v2825_v43 = vld [vmem:[#allocation10 + $0x2ac] sm:$0xf0] }
  0xe4   :  { %1882 = vmatpush.bf16.msrb.mxu2 %v2740_v50  ;;  %1895 = vmatpush.bf16.msrb.mxu3 %v2836_v51  ;;  %v2672_v50 = vor.u32 %v3019_v34, %v2669_v36  ;;  %v2992_v51 = vld [vmem:[#allocation10 + $0x94] sm:$0xf]  ;;  %v2636_v34 = vor.u32 %v3010_v25, %v2633_v26  ;;  %v3007_v36 = vld [vmem:[#allocation10 + $0x10c] sm:$0xf]  ;;  %v2828_v53 = vor.u32 %v3058_v42, %v2825_v43  ;;  %v2489_v9 = vld [vmem:[#allocation10 + $0xc] sm:$0xf0] }
  0xe5   :  { %1858 = vmatpush.bf16.msrb.mxu0 %v2524_v45  ;;  %1871 = vmatpush.bf16.msrb.mxu1 %v2620_v59  ;;  %v3023_v45 = vld [vmem:[#allocation10 + $0x188] sm:$0xf0]  ;;  %v370_v59 = vpack.c.bf16 %v366_v38, %v365_v37  ;;  %v2564_v2 = vor.u32 %v2992_v51, %v2561_v52  ;;  %v2744_v37 = vor.u32 %v3037_v29, %v2741_v30  ;;  %v2609_v51 = vld [vmem:[#allocation10 + $0xfc] sm:$0xf0]  ;;  %v3049_v55 = vld [vmem:[#allocation10 + $0x25c] sm:$0xf] }
  0xe6   :  { %v2680_v5 = vor.u32 %v3023_v45, %v2679_v58  ;;  %v2840_v38 = vor.u32 %v3061_v18, %v2837_v32  ;;  %v2732_v52 = vor.u32 %v3034_v39, %v2729_v40  ;;  %v2813_v58 = vld [vmem:[#allocation10 + $0x294] sm:$0xf0]  ;;  %v2789_v24 = vld [vmem:[#allocation10 + $0x264] sm:$0xf0]  ;;  %v2492_v25 = vor.u32 %v2974_v8, %v2489_v9  ;;  %v2994_v30 = vld [vmem:[#allocation10 + $0xa0] sm:$0xf0] }
  0xe7   :  { %v2567_v29 = vld [vmem:[#allocation10 + $0x98] sm:$0xf]  ;;  %v2867_v39 = vld [vmem:[#allocation10 + $0x2f0] sm:$0xf]  ;;  %v3069_v40 = vld [vmem:[#allocation10 + $0x2f8] sm:$0xf0] }
  0xe8   :  { %1883 = vmatpush.bf16.msrb.mxu2 %v2728_v0  ;;  %1896 = vmatpush.bf16.msrb.mxu3 %v2824_v1  ;;  %v3067_v0 = vld [vmem:[#allocation10 + $0x2ec] sm:$0xf]  ;;  %v2861_v1 = vld [vmem:[#allocation10 + $0x2f4] sm:$0xf0]  ;;  %v2568_v42 = vor.u32 %v2994_v30, %v2567_v29  ;;  %v2531_v8 = vld [vmem:[#allocation10 + $0x50] sm:$0xf] }
  0xe9   :  { %1859 = vmatpush.bf16.msrb.mxu0 %v2512_v10  ;;  %1872 = vmatpush.bf16.msrb.mxu1 %v2608_v11  ;;  %v1332_v10 = vunpack.c.l.b16 %v370_v59  ;;  %v1333_v11 = vunpack.c.h.b16 %v370_v59  ;;  %v2663_v18 = vld [vmem:[#allocation10 + $0x158] sm:$0xf]  ;;  %v2985_v9 = vld [vmem:[#allocation10 + $0x58] sm:$0xf0]  ;;  %v2723_v29 = vld [vmem:[#allocation10 + $0x1d0] sm:$0xf] }
  0xea   :  { %v3033_v30 = vld [vmem:[#allocation10 + $0x1d8] sm:$0xf0] }
  0xeb   :  { %v3414_v22 = vpack.c.b16 %v1332_v10, %v1332_v10  ;;  %v3416_v23 = vpack.c.b16 %v1333_v11, %v1333_v11  ;;  %v2998_v10 = vld [vmem:[#allocation10 + $0xc4] sm:$0xf]  ;;  %v2585_v11 = vld [vmem:[#allocation10 + $0xcc] sm:$0xf0] }
  0xec   :  { %1884 = vmatpush.bf16.msrb.mxu2 %v2716_v13  ;;  %1897 = vmatpush.bf16.msrb.mxu3 %v2812_v19  ;;  %v2864_v13 = vor.u32 %v3067_v0, %v2861_v1  ;;  %v2849_v19 = vld [vmem:[#allocation10 + $0x2dc] sm:$0xf0]  ;;  %v2816_v1 = vor.u32 %v3055_v57, %v2813_v58  ;;  %v2588_v26 = vor.u32 %v2998_v10, %v2585_v11  ;;  %v2855_v57 = vld [vmem:[#allocation10 + $0x2d8] sm:$0xf]  ;;  %v3066_v58 = vld [vmem:[#allocation10 + $0x2e0] sm:$0xf0] }
  0xed   :  { %1860 = vmatpush.bf16.msrb.mxu0 %v2500_v27  ;;  %1873 = vmatpush.bf16.msrb.mxu1 %v2596_v28  ;;  %v2756_v27 = vor.u32 %v3040_v14, %v2753_v15  ;;  %v2852_v28 = vor.u32 %v3064_v16, %v2849_v19  ;;  %v2675_v16 = vld [vmem:[#allocation10 + $0x170] sm:$0xf]  ;;  %v3021_v19 = vld [vmem:[#allocation10 + $0x178] sm:$0xf0]  ;;  %v2856_v63 = vor.u32 %v3066_v58, %v2855_v57  ;;  %v2795_v57 = vld [vmem:[#allocation10 + $0x260] sm:$0xf] }
  0xee   :  { %v3051_v58 = vld [vmem:[#allocation10 + $0x268] sm:$0xf0] }
  0xf0   :  { %1885 = vmatpush.bf16.msrb.mxu2 %v2704_v35  ;;  %1898 = vmatpush.bf16.msrb.mxu3 %v2800_v31  ;;  %v2983_v35 = vld [vmem:[#allocation10 + $0x4c] sm:$0xf]  ;;  %v2525_v31 = vld [vmem:[#allocation10 + $0x54] sm:$0xf0] }
  0xf1   :  { %1861 = vmatpush.bf16.msrb.mxu0 %v2488_v47  ;;  %1874 = vmatpush.bf16.msrb.mxu1 %v2584_v48  ;;  %v2528_v44 = vor.u32 %v2983_v35, %v2525_v31  ;;  %v2624_v47 = vor.u32 %v3007_v36, %v2621_v17  ;;  %v2980_v48 = vld [vmem:[#allocation10 + $0x34] sm:$0xf]  ;;  %v3022_v35 = vld [vmem:[#allocation10 + $0x184] sm:$0xf]  ;;  %v2681_v31 = vld [vmem:[#allocation10 + $0x18c] sm:$0xf0] }
  0xf2   :  { %v3046_v36 = vld [vmem:[#allocation10 + $0x244] sm:$0xf]  ;;  %v2777_v17 = vld [vmem:[#allocation10 + $0x24c] sm:$0xf0] }
  0xf4   :  { %1886 = vmatpush.bf16.msrb.mxu2 %v2692_v54  ;;  %1899 = vmatpush.bf16.msrb.mxu3 %v2788_v56  ;;  %v3031_v54 = vld [vmem:[#allocation10 + $0x1cc] sm:$0xf]  ;;  %v2717_v56 = vld [vmem:[#allocation10 + $0x1d4] sm:$0xf0] }
  0xf5   :  { %1906 = vmatpush.bf16.msra.mxu0 %v2576_v49  ;;  %1919 = vmatpush.bf16.msra.mxu1 %v2672_v50  ;;  %v2513_v49 = vld [vmem:[#allocation10 + $0x3c] sm:$0xf0]  ;;  %v3004_v50 = vld [vmem:[#allocation10 + $0xf4] sm:$0xf]  ;;  %v2720_v0 = vor.u32 %v3031_v54, %v2717_v56  ;;  %v2759_v54 = vld [vmem:[#allocation10 + $0x218] sm:$0xf] }
  0xf6   :  { %1862 = vmatmul.bf16.vlgmr.msrb.gmra.mxu0 %v3408_v46  ;;  %1875 = vmatmul.bf16.vlgmr.msrb.gmra.mxu1 %v3410_v41  ;;  %v2516_v45 = vor.u32 %v2980_v48, %v2513_v49  ;;  %v2612_v59 = vor.u32 %v3004_v50, %v2609_v51  ;;  %v2555_v48 = vld [vmem:[#allocation10 + $0x80] sm:$0xf]  ;;  %v2991_v49 = vld [vmem:[#allocation10 + $0x88] sm:$0xf0]  ;;  %v2868_v51 = vor.u32 %v3069_v40, %v2867_v39  ;;  %v3042_v56 = vld [vmem:[#allocation10 + $0x220] sm:$0xf0] }
  0xf7   :  { %v2760_v62 = vor.u32 %v3042_v56, %v2759_v54  ;;  %v2711_v39 = vld [vmem:[#allocation10 + $0x1b8] sm:$0xf]  ;;  %v3030_v40 = vld [vmem:[#allocation10 + $0x1c0] sm:$0xf0]  ;;  %v2699_v54 = vld [vmem:[#allocation10 + $0x1a0] sm:$0xf] }
  0xf8   :  { %1887 = vmatpush.bf16.msrb.mxu2 %v2680_v5  ;;  %1900 = vmatpush.bf16.msrb.mxu3 %v2776_v6  ;;  %v2801_v5 = vld [vmem:[#allocation10 + $0x27c] sm:$0xf0]  ;;  %v2504_v6 = vor.u32 %v2977_v60, %v2501_v61  ;;  %v2543_v60 = vld [vmem:[#allocation10 + $0x68] sm:$0xf]  ;;  %v2988_v61 = vld [vmem:[#allocation10 + $0x70] sm:$0xf0] }
  0xf9   :  { %1907 = vmatpush.bf16.msra.mxu0 %v2564_v2  ;;  %1920 = vmatpush.bf16.msra.mxu1 %v2660_v3  ;;  %v3028_v2 = vld [vmem:[#allocation10 + $0x1b4] sm:$0xf]  ;;  %v2705_v3 = vld [vmem:[#allocation10 + $0x1bc] sm:$0xf0]  ;;  %v2804_v15 = vor.u32 %v3052_v4, %v2801_v5  ;;  %v3063_v5 = vld [vmem:[#allocation10 + $0x2c8] sm:$0xf0] }
  0xfa   :  { %v2708_v14 = vor.u32 %v3028_v2, %v2705_v3  ;;  %v2747_v2 = vld [vmem:[#allocation10 + $0x200] sm:$0xf]  ;;  %v3039_v3 = vld [vmem:[#allocation10 + $0x208] sm:$0xf0] }
  0xfb   :  { %1888 = vmatmul.bf16.vlgmr.msrb.gmra.mxu2 %v3414_v22  ;;  %1901 = vmatmul.bf16.vlgmr.msrb.gmra.mxu3 %v3416_v23  ;;  %v2843_v4 = vld [vmem:[#allocation10 + $0x2c0] sm:$0xf]  ;;  %v2748_v10 = vor.u32 %v3039_v3, %v2747_v2  ;;  %v3027_v56 = vld [vmem:[#allocation10 + $0x1a8] sm:$0xf0] }
  0xfc   :  { %1932 = vmatpush.bf16.msra.mxu2 %v2768_v12  ;;  %1945 = vmatpush.bf16.msra.mxu3 %v2864_v13  ;;  %v2579_v12 = vld [vmem:[#allocation10 + $0xb0] sm:$0xf]  ;;  %v2997_v13 = vld [vmem:[#allocation10 + $0xb8] sm:$0xf0]  ;;  %v2844_v11 = vor.u32 %v3063_v5, %v2843_v4 }
  0xfd   :  { %1908 = vmatpush.bf16.msra.mxu0 %v2552_v20  ;;  %1921 = vmatpush.bf16.msra.mxu1 %v2648_v21  ;;  %v3025_v20 = vld [vmem:[#allocation10 + $0x19c] sm:$0xf]  ;;  %v2693_v21 = vld [vmem:[#allocation10 + $0x1a4] sm:$0xf0] }
  0xfe   :  { %v2696_v32 = vor.u32 %v3025_v20, %v2693_v21  ;;  %v2532_v20 = vor.u32 %v2985_v9, %v2531_v8 }
 0x100   :  { %1933 = vmatpush.bf16.msra.mxu2 %v2756_v27  ;;  %1946 = vmatpush.bf16.msra.mxu3 %v2852_v28  ;;  %v2580_v27 = vor.u32 %v2997_v13, %v2579_v12  ;;  %v2676_v28 = vor.u32 %v3021_v19, %v2675_v16  ;;  %v2627_v12 = vld [vmem:[#allocation10 + $0x110] sm:$0xf]  ;;  %v3009_v13 = vld [vmem:[#allocation10 + $0x118] sm:$0xf0]  ;;  %v2831_v16 = vld [vmem:[#allocation10 + $0x2a8] sm:$0xf] }
 0x101   :  { %1909 = vmatpush.bf16.msra.mxu0 %v2540_v33  ;;  %1922 = vmatpush.bf16.msra.mxu1 %v2636_v34  ;;  %v2792_v33 = vor.u32 %v3049_v55, %v2789_v24  ;;  %v3018_v34 = vld [vmem:[#allocation10 + $0x160] sm:$0xf0]  ;;  %v3060_v19 = vld [vmem:[#allocation10 + $0x2b0] sm:$0xf0]  ;;  %v2628_v21 = vor.u32 %v3009_v13, %v2627_v12  ;;  %v2519_v55 = vld [vmem:[#allocation10 + $0x38] sm:$0xf] }
 0x102   :  { %v2664_v43 = vor.u32 %v3018_v34, %v2663_v18  ;;  %v2982_v24 = vld [vmem:[#allocation10 + $0x40] sm:$0xf0]  ;;  %v2819_v18 = vld [vmem:[#allocation10 + $0x290] sm:$0xf] }
 0x104   :  { %1934 = vmatpush.bf16.msra.mxu2 %v2744_v37  ;;  %1947 = vmatpush.bf16.msra.mxu3 %v2840_v38  ;;  %v2771_v37 = vld [vmem:[#allocation10 + $0x230] sm:$0xf]  ;;  %v3045_v38 = vld [vmem:[#allocation10 + $0x238] sm:$0xf0] }
 0x105   :  { %1910 = vmatpush.bf16.msra.mxu0 %v2528_v44  ;;  %1923 = vmatpush.bf16.msra.mxu1 %v2624_v47  ;;  %v2684_v44 = vor.u32 %v3022_v35, %v2681_v31  ;;  %v2780_v47 = vor.u32 %v3046_v36, %v2777_v17  ;;  %v2772_v50 = vor.u32 %v3045_v38, %v2771_v37  ;;  %v2507_v35 = vld [vmem:[#allocation10 + $0x20] sm:$0xf]  ;;  %v2979_v31 = vld [vmem:[#allocation10 + $0x28] sm:$0xf0] }
 0x106   :  { %v2724_v36 = vor.u32 %v3033_v30, %v2723_v29  ;;  %v2603_v37 = vld [vmem:[#allocation10 + $0xe0] sm:$0xf]  ;;  %v3003_v38 = vld [vmem:[#allocation10 + $0xe8] sm:$0xf0] }
 0x108   :  { %1935 = vmatpush.bf16.msra.mxu2 %v2732_v52  ;;  %1948 = vmatpush.bf16.msra.mxu3 %v2828_v53  ;;  %v2651_v52 = vld [vmem:[#allocation10 + $0x140] sm:$0xf]  ;;  %v3015_v53 = vld [vmem:[#allocation10 + $0x148] sm:$0xf0] }
 0x109   :  { %1911 = vmatpush.bf16.msra.mxu0 %v2516_v45  ;;  %1924 = vmatpush.bf16.msra.mxu1 %v2612_v59  ;;  %v2556_v45 = vor.u32 %v2991_v49, %v2555_v48  ;;  %v2652_v59 = vor.u32 %v3015_v53, %v2651_v52  ;;  %v2495_v48 = vld [vmem:[#allocation10 + $0x8] sm:$0xf]  ;;  %v2976_v49 = vld [vmem:[#allocation10 + $0x10] sm:$0xf0] }
 0x10a   :  { %v2591_v52 = vld [vmem:[#allocation10 + $0xc8] sm:$0xf]  ;;  %v3000_v53 = vld [vmem:[#allocation10 + $0xd0] sm:$0xf0] }
 0x10c   :  { %1936 = vmatpush.bf16.msra.mxu2 %v2720_v0  ;;  %1949 = vmatpush.bf16.msra.mxu3 %v2816_v1  ;;  %v2639_v0 = vld [vmem:[#allocation10 + $0x128] sm:$0xf]  ;;  %v3012_v1 = vld [vmem:[#allocation10 + $0x130] sm:$0xf0] }
 0x10d   :  { %1912 = vmatpush.bf16.msra.mxu0 %v2504_v6  ;;  %1925 = vmatpush.bf16.msra.mxu1 %v2600_v7  ;;  %v2544_v6 = vor.u32 %v2988_v61, %v2543_v60  ;;  %v2640_v7 = vor.u32 %v3012_v1, %v2639_v0  ;;  %v2700_v60 = vor.u32 %v3027_v56, %v2699_v54  ;;  %v2783_v0 = vld [vmem:[#allocation10 + $0x248] sm:$0xf]  ;;  %v3048_v1 = vld [vmem:[#allocation10 + $0x250] sm:$0xf0] }
 0x10e   :  { %v2796_v61 = vor.u32 %v3051_v58, %v2795_v57  ;;  %v2784_v3 = vor.u32 %v3048_v1, %v2783_v0  ;;  %v1320_v57 = vld [vmem:[#allocation12] sm:$0x7] }
 0x10f   :  { %v1322_v58 = vperm.slane %v1320_v57, 0 }
 0x110   :  { %1937 = vmatpush.bf16.msra.mxu2 %v2708_v14  ;;  %1950 = vmatpush.bf16.msra.mxu3 %v2804_v15  ;;  %v2735_v14 = vld [vmem:[#allocation10 + $0x1e8] sm:$0xf]  ;;  %v3036_v15 = vld [vmem:[#allocation10 + $0x1f0] sm:$0xf0] }
 0x111   :  { %1913 = vmatpush.bf16.msra.mxu0 %v2492_v25  ;;  %1926 = vmatpush.bf16.msra.mxu1 %v2588_v26  ;;  %v2736_v25 = vor.u32 %v3036_v15, %v2735_v14  ;;  %v2832_v26 = vor.u32 %v3060_v19, %v2831_v16  ;;  %v499_v15 = vld [vmem:[#allocation9] sm:$0x7] }
 0x112   :  { %v501_v16 = vperm.slane %v499_v15, 0 }
 0x114   :  { %1938 = vmatpush.bf16.msra.mxu2 %v2696_v32  ;;  %1951 = vmatpush.bf16.msra.mxu3 %v2792_v33  ;;  %v3057_v32 = vld [vmem:[#allocation10 + $0x298] sm:$0xf0]  ;;  %v2520_v33 = vor.u32 %v2982_v24, %v2519_v55 }
 0x115   :  { %1958 = vmatpush.bf16.msrb.mxu0 %v2580_v27  ;;  %1971 = vmatpush.bf16.msrb.mxu1 %v2676_v28  ;;  %v2615_v27 = vld [vmem:[#allocation10 + $0xf8] sm:$0xf]  ;;  %v3006_v28 = vld [vmem:[#allocation10 + $0x100] sm:$0xf0]  ;;  %v2820_v17 = vor.u32 %v3057_v32, %v2819_v18 }
 0x116   :  { %1914 = vmatmul.bf16.vlgmr.msra.gmra.mxu0 %v3408_v46  ;;  %1927 = vmatmul.bf16.vlgmr.msra.gmra.mxu1 %v3410_v41  ;;  %v2616_v34 = vor.u32 %v3006_v28, %v2615_v27  ;;  %v503_v27 = vperm.slane %v499_v15, 2 }
 0x118   :  { %1939 = vmatpush.bf16.msra.mxu2 %v2684_v44  ;;  %1952 = vmatpush.bf16.msra.mxu3 %v2780_v47  ;;  %v2508_v44 = vor.u32 %v2979_v31, %v2507_v35  ;;  %v2604_v47 = vor.u32 %v3003_v38, %v2603_v37  ;;  %v2013_v31 = vld [vmem:[%s3447_s7] ss:$2 sm:$0x7] }
 0x119   :  { %1959 = vmatpush.bf16.msrb.mxu0 %v2568_v42  ;;  %1972 = vmatpush.bf16.msrb.mxu1 %v2664_v43  ;;  %v2807_v42 = vld [vmem:[#allocation10 + $0x278] sm:$0xf]  ;;  %v3054_v43 = vld [vmem:[#allocation10 + $0x280] sm:$0xf0] }
 0x11b   :  { %1940 = vmatmul.bf16.vlgmr.msra.gmra.mxu2 %v3414_v22  ;;  %1953 = vmatmul.bf16.vlgmr.msra.gmra.mxu3 %v3416_v23 }
 0x11c   :  { %1984 = vmatpush.bf16.msrb.mxu2 %v2772_v50  ;;  %1997 = vmatpush.bf16.msrb.mxu3 %v2868_v51  ;;  %v2712_v50 = vor.u32 %v3030_v40, %v2711_v39  ;;  %v2808_v51 = vor.u32 %v3054_v43, %v2807_v42  ;;  %v2015_v42 = vperm.slane %v2013_v31, 0 }
 0x11d   :  { %1960 = vmatpush.bf16.msrb.mxu0 %v2556_v45  ;;  %1973 = vmatpush.bf16.msrb.mxu1 %v2652_v59  ;;  %v2496_v45 = vor.u32 %v2976_v49, %v2495_v48  ;;  %v2592_v59 = vor.u32 %v3000_v53, %v2591_v52  ;;  %v2017_v48 = vperm.slane %v2013_v31, 2 }
 0x120   :  { %1985 = vmatpush.bf16.msrb.mxu2 %v2760_v62  ;;  %1998 = vmatpush.bf16.msrb.mxu3 %v2856_v63  ;;  %v2687_v62 = vld [vmem:[#allocation10 + $0x188] sm:$0xf]  ;;  %v3024_v63 = vld [vmem:[#allocation10 + $0x190] sm:$0xf0] }
 0x121   :  { %1961 = vmatpush.bf16.msrb.mxu0 %v2544_v6  ;;  %1974 = vmatpush.bf16.msrb.mxu1 %v2640_v7  ;;  %v2688_v2 = vor.u32 %v3024_v63, %v2687_v62 }
 0x124   :  { %1986 = vmatpush.bf16.msrb.mxu2 %v2748_v10  ;;  %1999 = vmatpush.bf16.msrb.mxu3 %v2844_v11 }
 0x125   :  { %1962 = vmatpush.bf16.msrb.mxu0 %v2532_v20  ;;  %1975 = vmatpush.bf16.msrb.mxu1 %v2628_v21 }
 0x128   :  { %1987 = vmatpush.bf16.msrb.mxu2 %v2736_v25  ;;  %2000 = vmatpush.bf16.msrb.mxu3 %v2832_v26 }
 0x129   :  { %1963 = vmatpush.bf16.msrb.mxu0 %v2520_v33  ;;  %1976 = vmatpush.bf16.msrb.mxu1 %v2616_v34 }
 0x12c   :  { %1988 = vmatpush.bf16.msrb.mxu2 %v2724_v36  ;;  %2001 = vmatpush.bf16.msrb.mxu3 %v2820_v17  ;;  %v2016_v17 = vperm.slane %v2013_v31, 1 }
 0x12d   :  { %1964 = vmatpush.bf16.msrb.mxu0 %v2508_v44  ;;  %1977 = vmatpush.bf16.msrb.mxu1 %v2604_v47 }
 0x130   :  { %1989 = vmatpush.bf16.msrb.mxu2 %v2712_v50  ;;  %2002 = vmatpush.bf16.msrb.mxu3 %v2808_v51  ;;  %v1042_v4 = vpop.f32.mrf.mxu0  ;;  %v1055_v5 = vpop.f32.mrf.mxu1 }
 0x131   :  { %1965 = vmatpush.bf16.msrb.mxu0 %v2496_v45  ;;  %1978 = vmatpush.bf16.msrb.mxu1 %v2592_v59  ;;  %v1043_v55 = vadd.f32 %v1042_v4, %v501_v16  ;;  %v1324_v16 = vperm.slane %v1320_v57, 2 }
 0x133   :  { %v1056_v25 = vadd.f32 %v1055_v5, %v1043_v55 }
 0x134   :  { %1990 = vmatpush.bf16.msrb.mxu2 %v2700_v60  ;;  %2003 = vmatpush.bf16.msrb.mxu3 %v2796_v61 }
 0x135   :  { %1966 = vmatmul.bf16.vlgmr.msrb.gmra.mxu0 %v3408_v46  ;;  %1979 = vmatmul.bf16.vlgmr.msrb.gmra.mxu1 %v3410_v41  ;;  %v502_v41 = vperm.slane %v499_v15, 1 }
 0x138   :  { %1991 = vmatpush.bf16.msrb.mxu2 %v2688_v2  ;;  %2004 = vmatpush.bf16.msrb.mxu3 %v2784_v3  ;;  %v1044_v6 = vpop.f32.mrf.mxu0  ;;  %v1057_v7 = vpop.f32.mrf.mxu1 }
 0x13b   :  { %1992 = vmatmul.bf16.vlgmr.msrb.gmra.mxu2 %v3414_v22  ;;  %2005 = vmatmul.bf16.vlgmr.msrb.gmra.mxu3 %v3416_v23 }
 0x13e   :  { %v1068_v8 = vpop.f32.mrf.mxu2  ;;  %v1081_v9 = vpop.f32.mrf.mxu3 }
 0x13f   :  { %v1069_v30 = vadd.f32 %v1068_v8, %v1056_v25 }
 0x140   :  { %v1094_v10 = vpop.f32.mrf.mxu0  ;;  %v1107_v11 = vpop.f32.mrf.mxu1 }
 0x141   :  { %v1095_v21 = vadd.f32 %v1094_v10, %v502_v41  ;;  %v1082_v35 = vadd.f32 %v1081_v9, %v1069_v30 }
 0x143   :  { %v1108_v23 = vadd.f32 %v1107_v11, %v1095_v21  ;;  %v1189_v40 = vmax.f32 %v1082_v35, 0.0 }
 0x145   :  { %v2021_v49 = vmul.f32 %v2015_v42, %v1189_v40 }
 0x146   :  { %v1070_v12 = vpop.f32.mrf.mxu2  ;;  %v1083_v13 = vpop.f32.mrf.mxu3 }
 0x147   :  { %v1323_v12 = vperm.slane %v1320_v57, 1 }
 0x148   :  { %v1096_v14 = vpop.f32.mrf.mxu0  ;;  %v1109_v46 = vpop.f32.mrf.mxu1 }
 0x14e   :  { %v1120_v19 = vpop.f32.mrf.mxu2  ;;  %v1133_v20 = vpop.f32.mrf.mxu3 }
 0x14f   :  { %v1121_v26 = vadd.f32 %v1120_v19, %v1108_v23  ;;  %v2869_v23 = vld [vmem:[%s3447_s7 + $0x1] ss:$2 sm:$0x7] }
 0x150   :  { %v2033_v35 = vperm.slane %v2869_v23, 2 }
 0x151   :  { %v1134_v18 = vadd.f32 %v1133_v20, %v1121_v26  ;;  %v2032_v26 = vperm.slane %v2869_v23, 1 }
 0x153   :  { %v1146_v22 = vpop.f32.mrf.mxu0  ;;  %v1159_v24 = vpop.f32.mrf.mxu1  ;;  %v1190_v36 = vmax.f32 %v1134_v18, 0.0  ;;  %v2031_v18 = vperm.slane %v2869_v23, 0 }
 0x154   :  { %v1147_v32 = vadd.f32 %v1146_v22, %v503_v27 }
 0x155   :  { %v2022_v44 = vmul.f32 %v2016_v17, %v1190_v36 }
 0x156   :  { %v1122_v28 = vpop.f32.mrf.mxu2  ;;  %v1135_v29 = vpop.f32.mrf.mxu3  ;;  %v1160_v37 = vadd.f32 %v1159_v24, %v1147_v32 }
 0x157   :  { %v2024_v52 = vadd.f32 %v2022_v44, %v2021_v49 }
 0x15b   :  { %v1148_v33 = vpop.f32.mrf.mxu0  ;;  %v1161_v34 = vpop.f32.mrf.mxu1 }
 0x15e   :  { %v1172_v38 = vpop.f32.mrf.mxu2  ;;  %v1185_v39 = vpop.f32.mrf.mxu3 }
 0x15f   :  { %v1173_v43 = vadd.f32 %v1172_v38, %v1160_v37 }
 0x161   :  { %v1186_v47 = vadd.f32 %v1185_v39, %v1173_v43  ;;  %v3081_v43 = vld [vmem:[%s3448_s8] ss:$0 sm:$0xff] }
 0x163   :  { %v1191_v50 = vmax.f32 %v1186_v47, 0.0 }
 0x165   :  { %v2023_v51 = vmul.f32 %v2017_v48, %v1191_v50 }
 0x166   :  { %v1174_v53 = vpop.f32.mrf.mxu2  ;;  %v1187_v54 = vpop.f32.mrf.mxu3 }
 0x167   :  { %v2025_v56 = vadd.f32 %v2024_v52, %v2023_v51 }
 0x169   :  { %2026 = vadd.xlane.f32.xlu0 %v2025_v56 }
 0x173   :  { %v1863_v45 = vpop.f32.mrf.mxu0  ;;  %v1876_v59 = vpop.f32.mrf.mxu1 }
 0x174   :  { %v1864_v60 = vadd.f32 %v1863_v45, %v1322_v58 }
 0x176   :  { %v1877_v61 = vadd.f32 %v1876_v59, %v1864_v60 }
 0x17b   :  { %v1865_v62 = vpop.f32.mrf.mxu0  ;;  %v1878_v63 = vpop.f32.mrf.mxu1 }
 0x17e   :  { %v1889_v0 = vpop.f32.mrf.mxu2  ;;  %v1902_v1 = vpop.f32.mrf.mxu3 }
 0x17f   :  { %v1890_v19 = vadd.f32 %v1889_v0, %v1877_v61 }
 0x181   :  { %v1903_v55 = vadd.f32 %v1902_v1, %v1890_v19 }
 0x183   :  { %v2010_v30 = vmax.f32 %v1903_v55, 0.0 }
 0x185   :  { %v2037_v31 = vmul.f32 %v2031_v18, %v2010_v30 }
 0x186   :  { %v1891_v2 = vpop.f32.mrf.mxu2  ;;  %v1904_v3 = vpop.f32.mrf.mxu3 }
 0x193   :  { %v1915_v4 = vpop.f32.mrf.mxu0  ;;  %v1928_v5 = vpop.f32.mrf.mxu1 }
 0x194   :  { %v1916_v13 = vadd.f32 %v1915_v4, %v1323_v12 }
 0x196   :  { %v1929_v14 = vadd.f32 %v1928_v5, %v1916_v13 }
 0x19b   :  { %v1917_v6 = vpop.f32.mrf.mxu0  ;;  %v1930_v7 = vpop.f32.mrf.mxu1 }
 0x19e   :  { %v1941_v8 = vpop.f32.mrf.mxu2  ;;  %v1954_v9 = vpop.f32.mrf.mxu3 }
 0x19f   :  { %v1942_v41 = vadd.f32 %v1941_v8, %v1929_v14 }
 0x1a1   :  { %v1955_v20 = vadd.f32 %v1954_v9, %v1942_v41 }
 0x1a3   :  { %v2011_v25 = vmax.f32 %v1955_v20, 0.0 }
 0x1a5   :  { %v2038_v33 = vmul.f32 %v2032_v26, %v2011_v25 }
 0x1a6   :  { %v1943_v10 = vpop.f32.mrf.mxu2  ;;  %v1956_v11 = vpop.f32.mrf.mxu3 }
 0x1a7   :  { %v2040_v37 = vadd.f32 %v2038_v33, %v2037_v31 }
 0x1b2   :  { %v1967_v46 = vpop.f32.mrf.mxu0  ;;  %v1980_v15 = vpop.f32.mrf.mxu1 }
 0x1b3   :  { %v1968_v21 = vadd.f32 %v1967_v46, %v1324_v16 }
 0x1b5   :  { %v1981_v27 = vadd.f32 %v1980_v15, %v1968_v21 }
 0x1ba   :  { %v1969_v22 = vpop.f32.mrf.mxu0  ;;  %v1982_v24 = vpop.f32.mrf.mxu1 }
 0x1be   :  { %v1993_v28 = vpop.f32.mrf.mxu2  ;;  %v2006_v29 = vpop.f32.mrf.mxu3 }
 0x1bf   :  { %v1994_v32 = vadd.f32 %v1993_v28, %v1981_v27 }
 0x1c1   :  { %v2007_v34 = vadd.f32 %v2006_v29, %v1994_v32 }
 0x1c3   :  { %v2012_v36 = vmax.f32 %v2007_v34, 0.0 }
 0x1c5   :  { %v2039_v17 = vmul.f32 %v2033_v35, %v2012_v36 }
 0x1c6   :  { %v1995_v38 = vpop.f32.mrf.mxu2  ;;  %v2008_v39 = vpop.f32.mrf.mxu3 }
 0x1c7   :  { %v2041_v40 = vadd.f32 %v2040_v37, %v2039_v17 }
 0x1c9   :  { %2042 = vadd.xlane.f32.xlu0 %v2041_v40 }
 0x1dc   :  { %v2027_v42 = vpop.xlane.xlu0 %2026 }
 0x23c   :  { %v2043_v44 = vpop.xlane.xlu0 %2042 }
 0x23d   :  { %v2045_v47 = vsel %vm2044_vm2, %v2027_v42, %v2043_v44 }
 0x23e   :  { %v2050_v48 = vadd.f32 %v3081_v43, %v2045_v47 }
 0x240   :  { %2052 = vst.msk [vmem:[%s3449_s9] sm:$0xff] %vm2051_vm3, %v2050_v48 }
 0x241   :  { %2057 = vsyncpa [#allocation3], 1 }
 0x242   :  { %2058 = vsyncpa [#allocation5], 1 }
 0x243   :  { %2059 = vsyncpa [#allocation8], 1 }
 0x244   :  { %2060 = vsyncpa [#allocation11], 1 }

</bundles_post_ra>
